<compile_context>
chip_gen: v7x
topology: tpu7x:2x2x1
jax: 0.10.0
libtpu: 0.0.40
codegen_flags: <defaults>
</compile_context>

<pallas_src>
import functools

import jax
import jax.numpy as jnp
from jax import lax
from jax.experimental import pallas as pl
from jax.experimental.pallas import tpu as pltpu

GAMMA = 2.0  # module default


def _pow_gamma(base, gamma):
    """base**gamma. Integer gamma -> repeated VPU multiplies (no EUP pow)."""
    if float(gamma).is_integer() and gamma >= 0:
        g = int(gamma)
        if g == 0:
            return jnp.ones_like(base)
        out = base
        for _ in range(g - 1):
            out = out * base
        return out
    return jnp.power(base, gamma)


def _round_up(v, m):
    return ((v + m - 1) // m) * m


def _focal_loss_kernel(x_ref, t_ref, out_ref, *, n_total, chunk,
                       tiles_per_partial, gamma):
    # x_ref: [tile_n, C] float block, t_ref: [1, tile_n] int32 (lane-dense),
    # out_ref: [1, 1, 1] float32 partial sum, resident across the j axis.
    p = pl.program_id(0)   # partial-sum lane ("parallel")
    j = pl.program_id(1)   # tile index along N ("arbitrary" reduction axis)

    @pl.when(j == 0)
    def _():
        out_ref[...] = jnp.zeros_like(out_ref)

    tile_n, n_classes = x_ref.shape
    n_chunks = tile_n // chunk            # static; tile_n % chunk == 0

    # Global row offset of this tile (UNclamped -> used for masking the
    # padded rows of the trailing partial block and phantom tiles).
    row0 = (p * tiles_per_partial + j) * tile_n

    # Loop-invariant index helpers (hoisted: JAX does not CSE broadcasts).
    ident = (lax.broadcasted_iota(jnp.int32, (chunk, chunk), 0) ==
             lax.broadcasted_iota(jnp.int32, (chunk, chunk), 1))
    class_iota = lax.broadcasted_iota(jnp.int32, (chunk, n_classes), 1)
    row_iota = lax.broadcasted_iota(jnp.int32, (chunk, 1), 0)

    def body(r, acc):
        start = pl.multiple_of(r * chunk, chunk)
        x = x_ref[pl.ds(start, chunk), :].astype(jnp.float32)     # (chunk, C)
        t_row = t_ref[:, pl.ds(start, chunk)]                     # (1, chunk)

        # Lane -> sublane relayout of the targets: t_col[s, 0] = t_row[0, s].
        t_b = jnp.broadcast_to(t_row, (chunk, chunk))
        t_col = jnp.sum(jnp.where(ident, t_b, 0), axis=1, keepdims=True)
        onehot = class_iota == t_col                               # (chunk, C)

        # Numerically stable log-softmax pieces; the only O(chunk*C)
        # transcendental work in the kernel.
        m = jnp.max(x, axis=1, keepdims=True)                      # (chunk, 1)
        z = x - m
        ez = jnp.exp(z)
        sez = jnp.sum(ez, axis=1, keepdims=True)                   # (chunk, 1)
        z_t = jnp.sum(jnp.where(onehot, z, 0.0), axis=1, keepdims=True)
        ez_t = jnp.sum(jnp.where(onehot, ez, 0.0), axis=1, keepdims=True)

        logpt = z_t - jnp.log(sez)          # log softmax at the target class
        pt = ez_t / sez                     # reuses exp slab; no narrow exp
        per_row = -(_pow_gamma(1.0 - pt, gamma) * logpt)           # (chunk, 1)

        # Mask rows past the true N (trailing partial block / phantom tiles).
        rows = row0 + start + row_iota
        per_row = jnp.where(rows < n_total, per_row, 0.0)
        return acc + per_row

    acc = lax.fori_loop(0, n_chunks, body, jnp.zeros((chunk, 1), jnp.float32))
    out_ref[...] = out_ref[...] + jnp.sum(acc)


def _generation_defaults():
    """Best-effort per-generation tuning knobs (safe fallbacks if unknown)."""
    kind = ""
    try:
        kind = jax.devices()[0].device_kind.lower()
    except Exception:
        pass
    if "v7" in kind:
        return {"x_block_bytes": 8 << 20, "vmem_cap": 48 << 20, "partials": 2}
    if "v6" in kind:
        return {"x_block_bytes": 4 << 20, "vmem_cap": 96 << 20, "partials": 1}
    if "v5p" in kind or "v4" in kind:
        return {"x_block_bytes": 4 << 20, "vmem_cap": 96 << 20, "partials": 2}
    if "v5" in kind:  # v5e / v5 lite
        return {"x_block_bytes": 2 << 20, "vmem_cap": 96 << 20, "partials": 1}
    return {"x_block_bytes": 2 << 20, "vmem_cap": 48 << 20, "partials": 1}


def _choose_tile_n(n, c, itemsize, x_block_bytes):
    """Row tile + chunk size, using VMEM-padded (128-lane) byte accounting."""
    if n <= 128:
        return n, n                              # single full-extent tile
    lanes = _round_up(max(c, 1), 128)            # x block pads C to 128 lanes
    rows = max(128, (x_block_bytes // (lanes * itemsize)) // 128 * 128)
    rows = min(rows, (n // 128) * 128)           # never exceed the array
    return int(rows), 128


def focal_loss2(x, target, gamma=GAMMA, weight=None, tile_n=None,
                num_partials=None):
    """x: [N, C] float (f32 or bf16), target: [N] int -> scalar float32 loss."""
    if weight is not None:
        # TODO(synk): per-class weights of nll_loss not implemented.
        raise NotImplementedError("per-class weight is not supported")

    n, c = x.shape
    itemsize = int(jnp.dtype(x.dtype).itemsize)
    gen = _generation_defaults()

    auto_tile, _ = _choose_tile_n(n, c, itemsize, gen["x_block_bytes"])
    if tile_n is None:
        tile_n = auto_tile
    elif n <= 128:
        tile_n = n
    else:
        tile_n = max(128, min((int(tile_n) // 128) * 128, (n // 128) * 128))
    chunk = tile_n if tile_n < 128 else 128      # tile_n % chunk == 0

    n_tiles = pl.cdiv(n, tile_n)
    if num_partials is None:
        num_partials = gen["partials"]
    num_partials = max(1, min(int(num_partials), n_tiles))
    tpp = pl.cdiv(n_tiles, num_partials)

    # Lane-dense target layout: one contiguous (1, tile_n) block per tile.
    t2d = target.astype(jnp.int32).reshape(1, n)

    def x_index(p_, j_):
        # Clamp so phantom tiles re-read the last real block; their rows are
        # masked out inside the kernel (using the unclamped row index).
        return (jnp.minimum(p_ * tpp + j_, n_tiles - 1), 0)

    def t_index(p_, j_):
        return (0, jnp.minimum(p_ * tpp + j_, n_tiles - 1))

    # Padded-aware VMEM accounting (double-buffered inputs + headroom for the
    # per-chunk temporaries) drives an explicit vmem_limit_bytes.
    lanes = _round_up(max(c, 1), 128)
    x_blk_bytes = tile_n * lanes * itemsize
    t_blk_bytes = 8 * _round_up(tile_n, 128) * 4
    need = 2 * (x_blk_bytes + t_blk_bytes) + (4 << 20)
    vmem_limit = int(min(max(need, 32 << 20), gen["vmem_cap"]))

    kernel = functools.partial(
        _focal_loss_kernel, n_total=n, chunk=chunk,
        tiles_per_partial=tpp, gamma=gamma)

    cost = pl.CostEstimate(
        flops=10 * n * c + 20 * n,
        transcendentals=n * c + 2 * n,
        bytes_accessed=n * c * itemsize + n * 4 + num_partials * 4,
    )

    partials = pl.pallas_call(
        kernel,
        out_shape=jax.ShapeDtypeStruct((num_partials, 1, 1), jnp.float32),
        grid_spec=pltpu.PrefetchScalarGridSpec(
            num_scalar_prefetch=0,
            grid=(num_partials, tpp),
            in_specs=[
                pl.BlockSpec((tile_n, c), x_index),
                pl.BlockSpec((1, tile_n), t_index),
            ],
            out_specs=pl.BlockSpec((1, 1, 1), lambda p_, j_: (p_, 0, 0)),
        ),
        compiler_params=pltpu.CompilerParams(
            dimension_semantics=("parallel", "arbitrary"),
            vmem_limit_bytes=vmem_limit,
        ),
        cost_estimate=cost,
    )(x, t2d)

    # Tiny cross-partial reduction + mean in plain JAX.
    return jnp.sum(partials) / jnp.float32(n)


def _reference(x, target, gamma=GAMMA):
    logpt = jax.nn.log_softmax(x.astype(jnp.float32), axis=1)
    pt = jnp.exp(logpt)
    logpt = (1.0 - pt) ** gamma * logpt
    picked = jnp.take_along_axis(
        logpt, target[:, None].astype(jnp.int32), axis=1)[:, 0]
    return jnp.mean(-picked)


if __name__ == "__main__":
    key = jax.random.PRNGKey(0)
    k1, k2 = jax.random.split(key)
    N, C = 300, 13
    x = jax.random.normal(k1, (N, C), dtype=jnp.float32)
    target = jax.random.randint(k2, (N,), 0, C, dtype=jnp.int32)

    ref = _reference(x, target)

    # 1) generation-tuned auto tiling (multi-tile, partial trailing block).
    out = focal_loss2(x, target)
    jax.block_until_ready(out)
    assert jnp.allclose(out, ref, atol=1e-5, rtol=1e-4), (out, ref)

    # 2) forced 128-row tiles + 2 partial-sum lanes: exercises multi-tile
    #    accumulation, remainder-row masking and a clamped phantom tile.
    out_tiled = focal_loss2(x, target, tile_n=128, num_partials=2)
    jax.block_until_ready(out_tiled)
    assert jnp.allclose(out_tiled, ref, atol=1e-5, rtol=1e-4), (out_tiled, ref)

    # 3) bf16 logits (f32 math inside the kernel).
    xb = x.astype(jnp.bfloat16)
    refb = _reference(xb, target)
    outb = focal_loss2(xb, target)
    jax.block_until_ready(outb)
    assert jnp.allclose(outb, refb, atol=1e-5, rtol=1e-4), (outb, refb)

    # 4) tiny-N single full-extent tile path (N < 128).
    Ns = 72
    xs = jax.random.normal(k1, (Ns, C), dtype=jnp.float32)
    ts = jax.random.randint(k2, (Ns,), 0, C, dtype=jnp.int32)
    outs = focal_loss2(xs, ts)
    jax.block_until_ready(outs)
    assert jnp.allclose(outs, _reference(xs, ts), atol=1e-5, rtol=1e-4)

    print("KERNEL_OK")
</pallas_src>

<mosaic_0001>
module attributes {stable_mosaic.version = 11 : i64} {
  func.func @_focal_loss_kernel(%arg0: i32, %arg1: i32, %arg2: memref<256x13xf32, #tpu.memory_space<vmem>>, %arg3: memref<1x256xi32, #tpu.memory_space<vmem>>, %arg4: memref<1x1x1xf32, #tpu.memory_space<vmem>>) attributes {dimension_semantics = [#tpu.dimension_semantics<parallel>, #tpu.dimension_semantics<arbitrary>], iteration_bounds = array<i64: 1, 2>, scalar_prefetch = 0 : i64, scratch_operands = 0 : i64, tpu.core_type = #tpu.core_type<tc>, window_params = [{transform_indices = @transform_0, window_bounds = array<i64: 256, 13>}, {transform_indices = @transform_1, window_bounds = array<i64: 1, 256>}, {transform_indices = @transform_2, window_bounds = array<i64: 1, 1, 1>}]} {
    %c0_i32 = arith.constant 0 : i32
    %0 = arith.cmpi eq, %arg1, %c0_i32 : i32
    %1 = arith.extui %0 : i1 to i32
    %c0_i32_0 = arith.constant 0 : i32
    %2 = arith.cmpi ne, %1, %c0_i32_0 : i32
    scf.if %2 {
      %cst_10 = arith.constant 0.000000e+00 : f32
      %22 = vector.broadcast %cst_10 : f32 to vector<1x1x1xf32>
      %c0_11 = arith.constant 0 : index
      %c0_12 = arith.constant 0 : index
      %c0_13 = arith.constant 0 : index
      %23 = vector.load %arg4[%c0_11, %c0_12, %c0_13] : memref<1x1x1xf32, #tpu.memory_space<vmem>>, vector<1x1x1xf32>
      tpu.vector_store %arg4[%c0_11, %c0_12, %c0_13], %22 {strides = array<i32>} : memref<1x1x1xf32, #tpu.memory_space<vmem>>, vector<1x1x1xf32>,
    } else {
    }
    %c2_i32 = arith.constant 2 : i32
    %3 = arith.muli %arg0, %c2_i32 : i32
    %4 = arith.addi %3, %arg1 : i32
    %c256_i32 = arith.constant 256 : i32
    %5 = arith.muli %4, %c256_i32 : i32
    %6 = tpu.iota {dimensions = array<i32: 0>} : vector<128x128xi32>
    %7 = tpu.iota {dimensions = array<i32: 1>} : vector<128x128xi32>
    %8 = arith.cmpi eq, %6, %7 : vector<128x128xi32>
    %9 = tpu.iota {dimensions = array<i32: 1>} : vector<128x13xi32>
    %10 = tpu.iota {dimensions = array<i32: 0>} : vector<128x1xi32>
    %cst = arith.constant 0.000000e+00 : f32
    %11 = vector.broadcast %cst : f32 to vector<128x1xf32>
    %c0_i32_1 = arith.constant 0 : i32
    %c2_i32_2 = arith.constant 2 : i32
    %12 = arith.addi %c0_i32_1, %c2_i32_2 : i32
    %c1_i32 = arith.constant 1 : i32
    %13 = scf.for %arg5 = %c0_i32_1 to %12 step %c1_i32 iter_args(%arg6 = %11) -> (vector<128x1xf32>)  : i32 {
      %c128_i32 = arith.constant 128 : i32
      %22 = arith.muli %arg5, %c128_i32 : i32
      %23 = tpu.assume_multiple %22, 128 : i32
      %24 = arith.index_cast %23 : i32 to index
      %c0_10 = arith.constant 0 : index
      %25 = vector.load %arg2[%24, %c0_10] : memref<256x13xf32, #tpu.memory_space<vmem>>, vector<128x13xf32>
      %c0_11 = arith.constant 0 : index
      %26 = arith.index_cast %23 : i32 to index
      %27 = vector.load %arg3[%c0_11, %26] : memref<1x256xi32, #tpu.memory_space<vmem>>, vector<1x128xi32>
      %28 = vector.shape_cast %27 : vector<1x128xi32> to vector<1x128xi32>
      %29 = vector.broadcast %28 : vector<1x128xi32> to vector<128x128xi32>
      %c0_i32_12 = arith.constant 0 : i32
      %30 = vector.broadcast %c0_i32_12 : i32 to vector<128x128xi32>
      %31 = arith.select %8, %29, %30 : vector<128x128xi1>, vector<128x128xi32>
      %cst_13 = arith.constant dense<0> : vector<128xi32>
      %32 = vector.multi_reduction <add>, %31, %cst_13 [1] : vector<128x128xi32> to vector<128xi32>
      %33 = vector.shape_cast %32 : vector<128xi32> to vector<128x1xi32>
      %34 = vector.broadcast %33 : vector<128x1xi32> to vector<128x13xi32>
      %35 = arith.cmpi eq, %9, %34 : vector<128x13xi32>
      %cst_14 = arith.constant dense<0xFF800000> : vector<128xf32>
      %36 = vector.multi_reduction <maximumf>, %25, %cst_14 [1] : vector<128x13xf32> to vector<128xf32>
      %37 = vector.shape_cast %36 : vector<128xf32> to vector<128x1xf32>
      %38 = vector.broadcast %37 : vector<128x1xf32> to vector<128x13xf32>
      %39 = arith.subf %25, %38 : vector<128x13xf32>
      %40 = math.exp %39 : vector<128x13xf32>
      %cst_15 = arith.constant dense<0.000000e+00> : vector<128xf32>
      %41 = vector.multi_reduction <add>, %40, %cst_15 [1] : vector<128x13xf32> to vector<128xf32>
      %42 = vector.shape_cast %41 : vector<128xf32> to vector<128x1xf32>
      %cst_16 = arith.constant 0.000000e+00 : f32
      %43 = vector.broadcast %cst_16 : f32 to vector<128x13xf32>
      %44 = arith.select %35, %39, %43 : vector<128x13xi1>, vector<128x13xf32>
      %cst_17 = arith.constant dense<0.000000e+00> : vector<128xf32>
      %45 = vector.multi_reduction <add>, %44, %cst_17 [1] : vector<128x13xf32> to vector<128xf32>
      %46 = vector.shape_cast %45 : vector<128xf32> to vector<128x1xf32>
      %cst_18 = arith.constant 0.000000e+00 : f32
      %47 = vector.broadcast %cst_18 : f32 to vector<128x13xf32>
      %48 = arith.select %35, %40, %47 : vector<128x13xi1>, vector<128x13xf32>
      %cst_19 = arith.constant dense<0.000000e+00> : vector<128xf32>
      %49 = vector.multi_reduction <add>, %48, %cst_19 [1] : vector<128x13xf32> to vector<128xf32>
      %50 = vector.shape_cast %49 : vector<128xf32> to vector<128x1xf32>
      %51 = math.log %42 : vector<128x1xf32>
      %52 = arith.subf %46, %51 : vector<128x1xf32>
      %53 = arith.divf %50, %42 : vector<128x1xf32>
      %cst_20 = arith.constant 1.000000e+00 : f32
      %54 = vector.broadcast %cst_20 : f32 to vector<128x1xf32>
      %55 = arith.subf %54, %53 : vector<128x1xf32>
      %56 = arith.mulf %55, %55 : vector<128x1xf32>
      %57 = arith.mulf %56, %52 : vector<128x1xf32>
      %cst_21 = arith.constant 0.000000e+00 : f32
      %58 = vector.broadcast %cst_21 : f32 to vector<128x1xf32>
      %59 = arith.subf %58, %57 : vector<128x1xf32>
      %60 = arith.addi %5, %23 : i32
      %61 = vector.broadcast %60 : i32 to vector<128x1xi32>
      %62 = arith.addi %61, %10 : vector<128x1xi32>
      %c300_i32 = arith.constant 300 : i32
      %63 = vector.broadcast %c300_i32 : i32 to vector<128x1xi32>
      %64 = arith.cmpi slt, %62, %63 : vector<128x1xi32>
      %cst_22 = arith.constant 0.000000e+00 : f32
      %65 = vector.broadcast %cst_22 : f32 to vector<128x1xf32>
      %66 = arith.select %64, %59, %65 : vector<128x1xi1>, vector<128x1xf32>
      %67 = arith.addf %arg6, %66 : vector<128x1xf32>
      scf.yield %67 : vector<128x1xf32>
    }
    %c2_i32_3 = arith.constant 2 : i32
    %c0 = arith.constant 0 : index
    %c0_4 = arith.constant 0 : index
    %c0_5 = arith.constant 0 : index
    %14 = vector.load %arg4[%c0, %c0_4, %c0_5] : memref<1x1x1xf32, #tpu.memory_space<vmem>>, vector<1x1x1xf32>
    %15 = vector.shape_cast %13 : vector<128x1xf32> to vector<1x128x1xf32>
    %cst_6 = arith.constant dense<0.000000e+00> : vector<1xf32>
    %16 = vector.multi_reduction <add>, %15, %cst_6 [1, 2] : vector<1x128x1xf32> to vector<1xf32>
    %17 = vector.shape_cast %16 : vector<1xf32> to vector<1x1x1xf32>
    %18 = vector.extract %17[0, 0, 0] : f32 from vector<1x1x1xf32>
    %19 = vector.broadcast %18 : f32 to vector<1x1x1xf32>
    %20 = arith.addf %14, %19 : vector<1x1x1xf32>
    %c0_7 = arith.constant 0 : index
    %c0_8 = arith.constant 0 : index
    %c0_9 = arith.constant 0 : index
    %21 = vector.load %arg4[%c0_7, %c0_8, %c0_9] : memref<1x1x1xf32, #tpu.memory_space<vmem>>, vector<1x1x1xf32>
    tpu.vector_store %arg4[%c0_7, %c0_8, %c0_9], %20 {strides = array<i32>} : memref<1x1x1xf32, #tpu.memory_space<vmem>>, vector<1x1x1xf32>,
    return
  }
  func.func @transform_0(%arg0: i32, %arg1: i32) -> (i32, i32) {
    %c2_i32 = arith.constant 2 : i32
    %0 = arith.muli %arg0, %c2_i32 : i32
    %1 = arith.addi %0, %arg1 : i32
    %c1_i32 = arith.constant 1 : i32
    %2 = arith.minsi %1, %c1_i32 : i32
    %c0_i32 = arith.constant 0 : i32
    %c0_i32_0 = arith.constant 0 : i32
    return %2, %c0_i32 : i32, i32
  }
  func.func @transform_1(%arg0: i32, %arg1: i32) -> (i32, i32) {
    %c2_i32 = arith.constant 2 : i32
    %0 = arith.muli %arg0, %c2_i32 : i32
    %1 = arith.addi %0, %arg1 : i32
    %c1_i32 = arith.constant 1 : i32
    %2 = arith.minsi %1, %c1_i32 : i32
    %c0_i32 = arith.constant 0 : i32
    %c0_i32_0 = arith.constant 0 : i32
    return %c0_i32, %2 : i32, i32
  }
  func.func @transform_2(%arg0: i32, %arg1: i32) -> (i32, i32, i32) {
    %c0_i32 = arith.constant 0 : i32
    %c0_i32_0 = arith.constant 0 : i32
    %c0_i32_1 = arith.constant 0 : i32
    return %arg0, %c0_i32, %c0_i32_0 : i32, i32, i32
  }
}

</mosaic_0001>

<bundles_post_ra>
// kernel: tpu_custom_call.1
= control target key start
LH: loop header
LB: loop body
LE: loop exit
PB: predicated region body
PF: predicated region fallthrough
CT: control target
= control target key end

     0   :  { %7 = vsyncpa [#allocation3], 0  ;;  %s1721_s9 = smov 0   ;;  %s1723_s10 = smov 0   ;;  %s2750_s0 = inlined_call_operand.vmem [shape: f32[300,13], index: 0, kind: input, shape index: {}]   ;;  %s2751_s1 = inlined_call_operand.vmem [shape: s32[1,300], index: 1, kind: input, shape index: {}]   ;;  %s2752_s2 = inlined_call_operand.hbm [shape: f32[1,1,1], index: 2, kind: output, shape index: {}]  }
   0x1   :  { %s1725_s11 = smov 0  }
   0x2 LB: > { %s1233_s12 = sadd.s32 4294967295, %s1634_s11   ;;  %s22_s13 = sadd.s32 1, %s1630_s10  ;;  %s1634_s11 = sphi %s1725_s11, %s13_s11   ;;  %s1630_s10 = sphi %s1723_s10, %s2850_s10   ;;  %s1626_s9 = sphi %s1721_s9, %s2849_s9  }
   0x3   : > { %p23_p0 = scmp.ge.s32.totalorder %s22_s13, 2  ;;  %p1236_p1 = scmp.ge.s32.totalorder %s1634_s11, 1 }
   0x4   : > { %p184_p2 = scmp.lt.s32.totalorder %s1634_s11, 3 }
   0x5   : > { %s2852_s13 = smov (%p23_p0, %s22_s13), 0 }
   0x6   : > { %p185_p3 = pnand %p1236_p1, %p184_p2 }
   0x8   : > { %188 = sbr.rel (%p185_p3) target bundleno = 735 (0x2df), region = 28 }
   0xf   : > { %p223_p4 = scmp.lt.s32.totalorder %s1626_s9, 1  ;;  %p1240_p7 = scmp.ne.s32.totalorder %s1626_s9, 0 }
  0x10   : > { %vm268_vm0 = vcmask (!%p1240_p7), 0   ;;  %v1704_v0 = vmov (!%p1240_p7), 0.0  }
  0x11   : > { %s224_s14 = scalar_select %p223_p4, %s1626_s9, 1 }
  0x12   : > { %267 = sbr.rel (%p1240_p7) target bundleno = 25 (0x19), region = 32  ;;  %269 = vst.msk [vmem:[#allocation2] sm:$0x1] (!%p1240_p7), %vm268_vm0, %v1704_v0 }
  0x13   : > { %s1237_s15 = sshll.u32 %s224_s14, 5  ;;  %s1239_s16 = sshll.u32 %s224_s14, 1 }
  0x14   : > { %p230_p5 = scmp.lt.s32.totalorder %s1237_s15, 37  ;;  %p252_p6 = scmp.lt.s32.totalorder %s1239_s16, 2 }
  0x16   : > { %s2854_s15 = smov (!%p230_p5, %s1237_s15), 37  ;;  %s2856_s16 = smov (!%p252_p6, %s1239_s16), 2 }
  0x17   : > { %s1238_s17 = sshll.u32 %s2854_s15, 3  ;;  %s254_s23 = scalar_lea.vmem %s2751_s1, %s2856_s16 }
  0x18   : > { %s1749_s20 = scalar_lea.vmem %s2750_s0, %s1238_s17 }
  0x19 PF: > { %s1241_s24 = sshll.u32 %s1626_s9, 8  ;;  %v273_v1 = vlaneseq  ;;  %v1838_v19 = vmov 0.0   ;;  %v1840_v20 = vmov 0.0   ;;  %v1842_v21 = vmov 0.0   ;;  %s1870_s25 = smov 0  }
  0x1a   : > { %v1844_v22 = vmov 0.0   ;;  %v1846_v23 = vmov 0.0   ;;  %v1848_v24 = vmov 0.0   ;;  %v1850_v25 = vmov 0.0  }
  0x1b   : > { %v1757_v2 = vshrl.u32 %v273_v1, 7  ;;  %v1759_v3 = vand.u32 127, %v273_v1  ;;  %v1852_v26 = vmov 0.0   ;;  %v1854_v27 = vmov 0.0  }
  0x1c   : > { %v1856_v28 = vmov 0.0   ;;  %v1858_v29 = vmov 0.0   ;;  %v1860_v30 = vmov 0.0   ;;  %v1862_v31 = vmov 0.0  }
  0x1d   : > { %v1762_v4 = vadd.s32 8, %v1757_v2  ;;  %v1765_v5 = vadd.s32 16, %v1757_v2  ;;  %v1768_v6 = vadd.s32 24, %v1757_v2  ;;  %v1771_v7 = vadd.s32 32, %v1757_v2 }
  0x1e   : > { %v1774_v8 = vadd.s32 40, %v1757_v2  ;;  %v1777_v9 = vadd.s32 48, %v1757_v2  ;;  %v1780_v10 = vadd.s32 56, %v1757_v2  ;;  %v1783_v11 = vadd.s32 64, %v1757_v2 }
  0x1f   : > { %v1786_v12 = vadd.s32 72, %v1757_v2  ;;  %v1789_v13 = vadd.s32 80, %v1757_v2  ;;  %v1792_v14 = vadd.s32 88, %v1757_v2  ;;  %v1795_v15 = vadd.s32 96, %v1757_v2 }
  0x20   : > { %2762 = vst [vmem:[#allocation5_spill] sm:$0xff] %v1774_v8  ;;  %2763 = vst [vmem:[#allocation6_spill] sm:$0xff] %v1780_v10  ;;  %v1798_v16 = vadd.s32 104, %v1757_v2  ;;  %v1801_v17 = vadd.s32 112, %v1757_v2  ;;  %v1804_v18 = vadd.s32 120, %v1757_v2  ;;  %vm300_vm9 = vcmp.eq.s32.totalorder %v1783_v11, %v1759_v3 }
  0x21   : > { %2764 = vst [vmem:[#allocation7_spill] sm:$0xff] %v1786_v12  ;;  %2765 = vst [vmem:[#allocation8_spill] sm:$0xff] %v1789_v13  ;;  %vm301_vm10 = vcmp.eq.s32.totalorder %v1786_v12, %v1759_v3  ;;  %vm302_vm11 = vcmp.eq.s32.totalorder %v1789_v13, %v1759_v3  ;;  %vm303_vm12 = vcmp.eq.s32.totalorder %v1792_v14, %v1759_v3  ;;  %v1864_v32 = vmov 0.0  }
  0x22   : > { %2766 = vst [vmem:[#allocation9_spill] sm:$0xff] %v1792_v14  ;;  %2767 = vst [vmem:[#allocation10_spill] sm:$0xff] %v1795_v15  ;;  %vm304_vm13 = vcmp.eq.s32.totalorder %v1795_v15, %v1759_v3  ;;  %vm305_vm14 = vcmp.eq.s32.totalorder %v1798_v16, %v1759_v3  ;;  %vm306_vm15 = vcmp.eq.s32.totalorder %v1801_v17, %v1759_v3  ;;  %v1866_v33 = vmov 0.0  }
  0x23   : > { %2768 = vst [vmem:[#allocation11_spill] sm:$0xff] %v1798_v16  ;;  %2769 = vst [vmem:[#allocation12_spill] sm:$0xff] %v1801_v17  ;;  %v1868_v34 = vmov 0.0  }
  0x24   : > { %2770 = vst [vmem:[#allocation13_spill] sm:$0xff] %v1804_v18 }
  0x25 LB: >> { %2771 = vst [vmem:[#allocation14_spill] sm:$0xff] %v1638_v19  ;;  %2772 = vst [vmem:[#allocation15_spill] sm:$0xff] %v1642_v20  ;;  %s1924_s26 = sshll.u32 %s1702_s25, 7  ;;  %vm580_vm0 = vcmask 105472   ;;  %vm2783_vm1 = vcmp.eq.s32.totalorder %v1757_v2, %v1759_v3  ;;  %vm2784_vm2 = vcmp.eq.s32.totalorder %v1762_v4, %v1759_v3  ;;  %vm2785_vm3 = vcmp.eq.s32.totalorder %v1765_v5, %v1759_v3  ;;  %s313_s25 = sadd.s32 1, %s1702_s25   ;;  %s1702_s25 = sphi %s1870_s25, %s313_s25   ;;  %v1698_v34 = vphi %v1868_v34, %v2847_v34   ;;  %v1694_v33 = vphi %v1866_v33, %v2846_v33   ;;  %v1690_v32 = vphi %v1864_v32, %v2845_v32   ;;  %v1686_v31 = vphi %v1862_v31, %v2844_v31   ;;  %v1682_v30 = vphi %v1860_v30, %v2843_v30   ;;  %v1678_v29 = vphi %v1858_v29, %v2842_v29   ;;  %v1674_v28 = vphi %v1856_v28, %v2841_v28   ;;  %v1670_v27 = vphi %v1854_v27, %v2840_v27   ;;  %v1666_v26 = vphi %v1852_v26, %v2839_v26   ;;  %v1662_v25 = vphi %v1850_v25, %v2838_v25   ;;  %v1658_v24 = vphi %v1848_v24, %v2837_v24   ;;  %v1654_v23 = vphi %v1846_v23, %v2836_v23   ;;  %v1650_v22 = vphi %v1844_v22, %v2835_v22   ;;  %v1646_v21 = vphi %v1842_v21, %v2834_v21   ;;  %v1642_v20 = vphi %v1840_v20, %v2833_v20   ;;  %v1638_v19 = vphi %v1838_v19, %v2832_v19  }
  0x26   : >> { %2773 = vst [vmem:[#allocation16_spill] sm:$0xff] %v1646_v21  ;;  %2774 = vst [vmem:[#allocation17_spill] sm:$0xff] %v1650_v22  ;;  %s1928_s27 = scalar_lea.vmem %s1749_s20, %s1924_s26  ;;  %s348_s28 = sshra.s32 %s1924_s26, 7  ;;  %vm2786_vm5 = vcmp.eq.s32.totalorder %v1771_v7, %v1759_v3  ;;  %vm2787_vm4 = vcmp.eq.s32.totalorder %v1768_v6, %v1759_v3  ;;  %vm2788_vm7 = vcmp.eq.s32.totalorder %v1777_v9, %v1759_v3 }
  0x27   : >> { %2775 = vst [vmem:[#allocation18_spill] sm:$0xff] %v1654_v23  ;;  %2776 = vst [vmem:[#allocation19_spill] sm:$0xff] %v1658_v24  ;;  %v1931_v35 = vld [vmem:[%s1928_s27] sm:$0xff]  ;;  %s350_s3 = scalar_lea.vmem %s254_s23, %s348_s28  ;;  %v1956_v50 = vld [vmem:[%s1928_s27 + $0x10] sm:$0xff]  ;;  %s997_s4 = sadd.s32 %s1924_s26, %s1241_s24 }
  0x28   : >> { %2777 = vst [vmem:[#allocation20_spill] sm:$0xff] %v1662_v25  ;;  %2778 = vst [vmem:[#allocation21_spill] sm:$0xff] %v1666_v26  ;;  %v581_v36 = vsel %vm580_vm0, %v1931_v35, -inf  ;;  %v1941_v37 = vld [vmem:[%s350_s3] ss:$0 sm:$0xff]  ;;  %v587_v52 = vsel %vm580_vm0, %v1956_v50, -inf }
  0x29   : >> { %2779 = vst [vmem:[#allocation22_spill] sm:$0xff] %v1670_v27  ;;  %2780 = vst [vmem:[#allocation23_spill] sm:$0xff] %v1674_v28  ;;  %582 = vmax.xlane.f32.xlu1 %v581_v36  ;;  %v356_v38 = vsel %vm2783_vm1, %v1941_v37, 0  ;;  %v357_v39 = vsel %vm2784_vm2, %v1941_v37, 0  ;;  %v358_v44 = vsel %vm2785_vm3, %v1941_v37, 0  ;;  %v1961_v53 = vld [vmem:[%s1928_s27 + $0x8] sm:$0xff] }
  0x2a   : >> { %2781 = vst [vmem:[#allocation24_spill] sm:$0xff] %v1678_v29  ;;  %2782 = vst [vmem:[#allocation25_spill] sm:$0xff] %v1686_v31  ;;  %v372_v40 = vand.u32 65535, %v356_v38  ;;  %v384_v41 = vand.u32 65535, %v357_v39  ;;  %v373_v42 = vshrl.u32 %v356_v38, 16  ;;  %v385_v43 = vshrl.u32 %v357_v39, 16 }
  0x2b   : >> { %v396_v49 = vand.u32 65535, %v358_v44  ;;  %v1964_v54 = vld [vmem:[%s1928_s27 + $0x20] sm:$0xff]  ;;  %v584_v55 = vsel %vm580_vm0, %v1961_v53, -inf  ;;  %v1971_v57 = vld [vmem:[%s1928_s27 + $0x18] sm:$0xff]  ;;  %v1974_v58 = vld [vmem:[%s1928_s27 + $0x30] sm:$0xff]  ;;  %v2067_v19 = vsel %vm302_vm11, %v1941_v37, 0 }
  0x2c   : >> { %v374_v45 = vcvt.s32.f32 %v372_v40  ;;  %v386_v46 = vcvt.s32.f32 %v384_v41  ;;  %v375_v47 = vcvt.s32.f32 %v373_v42  ;;  %v387_v48 = vcvt.s32.f32 %v385_v43  ;;  %v1981_v61 = vld [vmem:[%s1928_s27 + $0x28] sm:$0xff]  ;;  %v1984_v62 = vld [vmem:[%s1928_s27 + $0x40] sm:$0xff]  ;;  %v1991_v1 = vld [vmem:[%s1928_s27 + $0x38] sm:$0xff]  ;;  %p2633_p8 = scmp.ge.s32.totalorder %s313_s25, 2  }
  0x2d   : >> { %v398_v51 = vcvt.s32.f32 %v396_v49  ;;  %v593_v56 = vsel %vm580_vm0, %v1964_v54, -inf  ;;  %v590_v59 = vsel %vm580_vm0, %v1971_v57, -inf  ;;  %v599_v60 = vsel %vm580_vm0, %v1974_v58, -inf  ;;  %v1994_v36 = vld [vmem:[%s1928_s27 + $0x50] sm:$0xff]  ;;  %v2001_v40 = vld [vmem:[%s1928_s27 + $0x48] sm:$0xff]  ;;  %v2004_v41 = vld [vmem:[%s1928_s27 + $0x60] sm:$0xff] }
  0x2e   : >> { %376 = vadd.xlane.f32.xlu0 %v374_v45  ;;  %388 = vadd.xlane.f32.xlu1 %v386_v46  ;;  %v596_v63 = vsel %vm580_vm0, %v1981_v61, -inf  ;;  %v605_v0 = vsel %vm580_vm0, %v1984_v62, -inf  ;;  %v602_v38 = vsel %vm580_vm0, %v1991_v1, -inf  ;;  %v611_v39 = vsel %vm580_vm0, %v1994_v36, -inf  ;;  %v2011_v45 = vld [vmem:[%s1928_s27 + $0x58] sm:$0xff]  ;;  %v2014_v46 = vld [vmem:[%s1928_s27 + $0x70] sm:$0xff] }
  0x2f   : >> { %v608_v42 = vsel %vm580_vm0, %v2001_v40, -inf  ;;  %v617_v43 = vsel %vm580_vm0, %v2004_v41, -inf  ;;  %v623_v49 = vsel %vm580_vm0, %v2014_v46, -inf  ;;  %v2789_v8 = vld [vmem:[#allocation5_spill] sm:$0xff]  ;;  %v2791_v10 = vld [vmem:[#allocation6_spill] sm:$0xff]  ;;  %v365_v21 = vsel %vm301_vm10, %v1941_v37, 0 }
  0x30   : >> { %vm2790_vm6 = vcmp.eq.s32.totalorder %v2789_v8, %v1759_v3  ;;  %vm2792_vm8 = vcmp.eq.s32.totalorder %v2791_v10, %v1759_v3  ;;  %v368_v23 = vsel %vm304_vm13, %v1941_v37, 0  ;;  %v370_v27 = vsel %vm306_vm15, %v1941_v37, 0  ;;  %v2799_v18 = vld [vmem:[#allocation13_spill] sm:$0xff]  ;;  %s1705_s6 = smov (%p2633_p8), [#allocation2]   ;;  %p2715_p9 = scmp.eq.s32.totalorder (%p2633_p8), %s1233_s12, 1 }
  0x31   : >> { %vm2800_vm1 = vcmp.eq.s32.totalorder %v2799_v18, %v1759_v3  ;;  %s1118_s7 = sshll.u32 (%p2633_p8), %s1705_s6, 4  ;;  %s1119_s7 = int_to_ptr.vmem [resolvable:$true] %s1118_s7 }
  0x32   : >> { %378 = vadd.xlane.f32.xlu0 %v375_v47  ;;  %390 = vadd.xlane.f32.xlu1 %v387_v48  ;;  %v397_v47 = vshrl.u32 %v358_v44, 16  ;;  %v614_v48 = vsel %vm580_vm0, %v2011_v45, -inf  ;;  %s1514_s14 = scalar_lea.vmem (%p2633_p8), %s1119_s7, 16  ;;  %s1520_s15 = scalar_lea.vmem (%p2633_p8), %s1119_s7, 32 }
  0x33   : > { %p1515_p10 = scmp.ne.s32.totalorder (%p2633_p8), %s1119_s7, %s1514_s14  ;;  %p1521_p13 = scmp.lt.s32.totalorder (%p2633_p8), %s1119_s7, %s1119_s7 }
  0x34   : > { %p1522_p0 = scmp.lt.s32.totalorder (%p2633_p8), %s1520_s15, %s1514_s14 }
  0x35   : > { %p1516_p11 = pnand (%p2633_p8), %p1515_p10, %p2715_p9 }
  0x36   : >> { %400 = vadd.xlane.f32.xlu0 %v398_v51  ;;  %588 = vmax.xlane.f32.xlu1 %v587_v52  ;;  %v2024_v51 = vsel %vm2786_vm5, %v1941_v37, 0  ;;  %v2027_v52 = vld [vmem:[%s1928_s27 + $0x68] sm:$0xff]  ;;  %p1523_p1 = por (%p2633_p8), %p1522_p0, %p1521_p13 }
  0x37   : >> { %v620_v44 = vsel %vm580_vm0, %v2027_v52, -inf  ;;  %p1517_p12 = pneg (%p2633_p8), %p1516_p11 }
  0x39   : > { %p1524_p2 = pnand (%p2633_p8), %p1523_p1, %p1517_p12 }
  0x3a   : >> { %585 = vmax.xlane.f32.xlu0 %v584_v55  ;;  %594 = vmax.xlane.f32.xlu1 %v593_v56  ;;  %v399_v55 = vcvt.s32.f32 %v397_v47  ;;  %v421_v56 = vshrl.u32 %v2024_v51, 16  ;;  %v2056_v47 = vsel %vm300_vm9, %v1941_v37, 0  ;;  %vm1107_vm9 = vcmask (%p2633_p8), 0  }
  0x3e   : >> { %591 = vmax.xlane.f32.xlu0 %v590_v59  ;;  %600 = vmax.xlane.f32.xlu1 %v599_v60  ;;  %v359_v59 = vsel %vm2787_vm4, %v1941_v37, 0  ;;  %v2040_v60 = vsel %vm2788_vm7, %v1941_v37, 0 }
  0x3f   : >> { %v408_v20 = vand.u32 65535, %v359_v59  ;;  %v444_v18 = vand.u32 65535, %v2040_v60 }
  0x42   : >> { %597 = vmax.xlane.f32.xlu0 %v596_v63  ;;  %606 = vmax.xlane.f32.xlu1 %v605_v0  ;;  %v2043_v63 = vld [vmem:[%s1928_s27 + $0x78] sm:$0xff]  ;;  %v423_v0 = vcvt.s32.f32 %v421_v56  ;;  %v469_v56 = vshrl.u32 %v2056_v47, 16 }
  0x46   : >> { %603 = vmax.xlane.f32.xlu0 %v602_v38  ;;  %612 = vmax.xlane.f32.xlu1 %v611_v39  ;;  %v409_v38 = vshrl.u32 %v359_v59, 16  ;;  %v445_v39 = vshrl.u32 %v2040_v60, 16  ;;  %v516_v60 = vand.u32 65535, %v368_v23 }
  0x4a   : >> { %609 = vmax.xlane.f32.xlu0 %v608_v42  ;;  %618 = vmax.xlane.f32.xlu1 %v617_v43  ;;  %v626_v42 = vsel %vm580_vm0, %v2043_v63, -inf  ;;  %v361_v43 = vsel %vm2790_vm6, %v1941_v37, 0 }
  0x4b   : >> { %v432_v8 = vand.u32 65535, %v361_v43 }
  0x4e   : >> { %615 = vmax.xlane.f32.xlu0 %v614_v48  ;;  %624 = vmax.xlane.f32.xlu1 %v623_v49  ;;  %v411_v48 = vcvt.s32.f32 %v409_v38  ;;  %v447_v49 = vcvt.s32.f32 %v445_v39  ;;  %v493_v39 = vshrl.u32 %v2067_v19, 16 }
  0x52   : >> { %621 = vmax.xlane.f32.xlu0 %v620_v44  ;;  %402 = vadd.xlane.f32.xlu1 %v399_v55  ;;  %v433_v55 = vshrl.u32 %v361_v43, 16  ;;  %v363_v44 = vsel %vm2792_vm8, %v1941_v37, 0 }
  0x53   : >> { %v457_v38 = vshrl.u32 %v363_v44, 16 }
  0x55   : >> { %v459_v25 = vcvt.s32.f32 %v457_v38  ;;  %v369_v38 = vsel %vm305_vm14, %v1941_v37, 0 }
  0x56   : >> { %627 = vmax.xlane.f32.xlu0 %v626_v42  ;;  %426 = vadd.xlane.f32.xlu1 %v423_v0  ;;  %v435_v42 = vcvt.s32.f32 %v433_v55  ;;  %v471_v0 = vcvt.s32.f32 %v469_v56  ;;  %v517_v55 = vshrl.u32 %v368_v23, 16  ;;  %v367_v56 = vsel %vm303_vm12, %v1941_v37, 0 }
  0x57   : >> { %v529_v10 = vshrl.u32 %v369_v38, 16  ;;  %v504_v43 = vand.u32 65535, %v367_v56 }
  0x58   : >> { %v519_v12 = vcvt.s32.f32 %v517_v55 }
  0x5a   : >> { %414 = vadd.xlane.f32.xlu0 %v411_v48  ;;  %450 = vadd.xlane.f32.xlu1 %v447_v49  ;;  %v495_v48 = vcvt.s32.f32 %v493_v39  ;;  %v481_v49 = vshrl.u32 %v365_v21, 16 }
  0x5c   : >> { %v483_v29 = vcvt.s32.f32 %v481_v49  ;;  %v410_v49 = vcvt.s32.f32 %v408_v20  ;;  %v468_v20 = vand.u32 65535, %v2056_v47 }
  0x5e   : >> { %438 = vadd.xlane.f32.xlu0 %v435_v42  ;;  %474 = vadd.xlane.f32.xlu1 %v471_v0  ;;  %v505_v42 = vshrl.u32 %v367_v56, 16  ;;  %v541_v0 = vshrl.u32 %v370_v27, 16 }
  0x60   : >> { %v507_v39 = vcvt.s32.f32 %v505_v42  ;;  %v543_v14 = vcvt.s32.f32 %v541_v0  ;;  %v456_v42 = vand.u32 65535, %v363_v44 }
  0x62   : >> { %462 = vadd.xlane.f32.xlu0 %v459_v25  ;;  %498 = vadd.xlane.f32.xlu1 %v495_v48  ;;  %v371_v25 = vsel %vm2800_vm1, %v1941_v37, 0  ;;  %v531_v48 = vcvt.s32.f32 %v529_v10  ;;  %v458_v0 = vcvt.s32.f32 %v456_v42  ;;  %v480_v37 = vand.u32 65535, %v365_v21 }
  0x63   : >> { %v553_v55 = vshrl.u32 %v371_v25, 16  ;;  %v446_v10 = vcvt.s32.f32 %v444_v18  ;;  %v552_v21 = vand.u32 65535, %v371_v25  ;;  %v518_v18 = vcvt.s32.f32 %v516_v60 }
  0x65   : >> { %v555_v16 = vcvt.s32.f32 %v553_v55  ;;  %v540_v55 = vand.u32 65535, %v370_v27 }
  0x66   : >> { %486 = vadd.xlane.f32.xlu0 %v483_v29  ;;  %522 = vadd.xlane.f32.xlu1 %v519_v12  ;;  %v434_v29 = vcvt.s32.f32 %v432_v8  ;;  %v420_v12 = vand.u32 65535, %v2024_v51  ;;  %v470_v8 = vcvt.s32.f32 %v468_v20  ;;  %v492_v51 = vand.u32 65535, %v2067_v19 }
  0x67   : >> { %v542_v47 = vcvt.s32.f32 %v540_v55 }
  0x68   : >> { %v422_v59 = vcvt.s32.f32 %v420_v12  ;;  %v494_v44 = vcvt.s32.f32 %v492_v51 }
  0x6a   : >> { %510 = vadd.xlane.f32.xlu0 %v507_v39  ;;  %546 = vadd.xlane.f32.xlu1 %v543_v14  ;;  %v482_v14 = vcvt.s32.f32 %v480_v37  ;;  %v506_v39 = vcvt.s32.f32 %v504_v43 }
  0x6e   : >> { %534 = vadd.xlane.f32.xlu0 %v531_v48  ;;  %412 = vadd.xlane.f32.xlu1 %v410_v49  ;;  %v554_v49 = vcvt.s32.f32 %v552_v21 }
  0x72   : >> { %558 = vadd.xlane.f32.xlu0 %v555_v16  ;;  %436 = vadd.xlane.f32.xlu1 %v434_v29  ;;  %v528_v16 = vand.u32 65535, %v369_v38 }
  0x74   : >> { %v530_v48 = vcvt.s32.f32 %v528_v16 }
  0x76   : >> { %424 = vadd.xlane.f32.xlu0 %v422_v59  ;;  %460 = vadd.xlane.f32.xlu1 %v458_v0 }
  0x7a   : >> { %448 = vadd.xlane.f32.xlu0 %v446_v10  ;;  %484 = vadd.xlane.f32.xlu1 %v482_v14 }
  0x7e   : >> { %472 = vadd.xlane.f32.xlu0 %v470_v8  ;;  %508 = vadd.xlane.f32.xlu1 %v506_v39 }
  0x82   : >> { %496 = vadd.xlane.f32.xlu0 %v494_v44  ;;  %532 = vadd.xlane.f32.xlu1 %v530_v48 }
  0x86   : >> { %520 = vadd.xlane.f32.xlu0 %v518_v18  ;;  %556 = vadd.xlane.f32.xlu1 %v554_v49 }
  0x8a   : >> { %544 = vadd.xlane.f32.xlu0 %v542_v47 }
  0xb6   : >> { %v583_v56 = vpop.xlane.xlu1 %582 }
  0xb7   : >> { %v629_v27 = vsub.f32 %v1931_v35, %v583_v56 }
  0xbb   : >> { %v377_v29 = vpop.xlane.xlu0 %376  ;;  %v389_v12 = vpop.xlane.xlu1 %388 }
  0xbc   : >> { %v380_v42 = vcvt.f32.s32 %v377_v29  ;;  %v392_v25 = vcvt.f32.s32 %v389_v12  ;;  %v645_v29 = vmul.f32 1.442695, %v629_v27 }
  0xbe   : >> { %1418 = vpow2.f32 %v645_v29 }
  0xbf   : >> { %v379_v19 = vpop.xlane.xlu0 %378  ;;  %v391_v38 = vpop.xlane.xlu1 %390 }
  0xc0   : >> { %v381_v59 = vcvt.f32.s32 %v379_v19  ;;  %v393_v0 = vcvt.f32.s32 %v391_v38 }
  0xc2   : >> { %v382_v37 = vshll.u32 %v381_v59, 16  ;;  %v394_v23 = vshll.u32 %v393_v0, 16 }
  0xc3   : >> { %v401_v10 = vpop.xlane.xlu0 %400  ;;  %v589_v14 = vpop.xlane.xlu1 %588 }
  0xc4   : >> { %v2098_v20 = vadd.s32 %v382_v37, %v380_v42  ;;  %v2101_v43 = vadd.s32 %v394_v23, %v392_v25  ;;  %v631_v12 = vsub.f32 %v1956_v50, %v589_v14  ;;  %v404_v25 = vcvt.f32.s32 %v401_v10 }
  0xc6   : >> { %vm564_vm1 = vcmp.eq.s32.totalorder %v1759_v3, %v2098_v20  ;;  %vm565_vm2 = vcmp.eq.s32.totalorder %v1759_v3, %v2101_v43  ;;  %v649_v42 = vmul.f32 1.442695, %v631_v12 }
  0xc7   : >> { %v586_v8 = vpop.xlane.xlu0 %585  ;;  %v595_v39 = vpop.xlane.xlu1 %594  ;;  %v725_v51 = vsel %vm564_vm1, %v629_v27, 0.0 }
  0xc8   : >> { %v2109_v16 = vsub.f32 %v1961_v53, %v586_v8  ;;  %v741_v44 = vsel %vm580_vm0, %v725_v51, 0.0  ;;  %v2129_v59 = vsub.f32 %v1964_v54, %v595_v39  ;;  %1420 = vpow2.f32 %v649_v42 }
  0xc9   : >> { %742 = vadd.xlane.f32.xlu0 %v741_v44 }
  0xca   : >> { %v726_v35 = vsel %vm565_vm2, %v2109_v16, 0.0  ;;  %v653_v51 = vmul.f32 1.442695, %v2129_v59 }
  0xcb   : >> { %v592_v48 = vpop.xlane.xlu0 %591  ;;  %v601_v60 = vpop.xlane.xlu1 %600  ;;  %v744_v21 = vsel %vm580_vm0, %v726_v35, 0.0 }
  0xcc   : >> { %745 = vadd.xlane.f32.xlu1 %v744_v21  ;;  %v2135_v27 = vsub.f32 %v1974_v58, %v601_v60  ;;  %1422 = vpow2.f32 %v653_v51  ;;  %v2155_v21 = vpop.eup %1418 }
  0xce   : >> { %v657_v54 = vmul.f32 1.442695, %v2135_v27 }
  0xcf   : >> { %v2119_v18 = vpop.xlane.xlu0 %597  ;;  %v607_v53 = vpop.xlane.xlu1 %606 }
  0xd0   : >> { %v2147_v10 = vsub.f32 %v1984_v62, %v607_v53  ;;  %1424 = vpow2.f32 %v657_v54 }
  0xd2   : >> { %v661_v29 = vmul.f32 1.442695, %v2147_v10 }
  0xd3   : >> { %v2121_v49 = vpop.xlane.xlu0 %603  ;;  %v613_v55 = vpop.xlane.xlu1 %612 }
  0xd4   : >> { %v2159_v42 = vsub.f32 %v1994_v36, %v613_v55  ;;  %1426 = vpow2.f32 %v661_v29 }
  0xd7   : >> { %v2123_v47 = vpop.xlane.xlu0 %609  ;;  %v619_v56 = vpop.xlane.xlu1 %618 }
  0xdb   : >> { %v2126_v19 = vpop.xlane.xlu0 %615  ;;  %v625_v38 = vpop.xlane.xlu1 %624 }
  0xdf   : >> { %v2131_v0 = vpop.xlane.xlu0 %621  ;;  %v403_v37 = vpop.xlane.xlu1 %402 }
  0xe0   : >> { %v405_v23 = vcvt.f32.s32 %v403_v37  ;;  %v677_v37 = vsel %vm580_vm0, %v2155_v21, 0.0 }
  0xe2   : >> { %v406_v8 = vshll.u32 %v405_v23, 16  ;;  %v2167_v23 = vpop.eup %1420 }
  0xe3   : >> { %v2137_v50 = vpop.xlane.xlu0 %627  ;;  %v2139_v14 = vpop.xlane.xlu1 %426  ;;  %v683_v55 = vsel %vm580_vm0, %v2167_v23, 0.0 }
  0xe4   : >> { %v2141_v44 = vadd.s32 %v406_v8, %v404_v25  ;;  %v2171_v25 = vsub.f32 %v2004_v41, %v619_v56  ;;  %v2179_v51 = vpop.eup %1422  ;;  %v2277_v20 = vsub.f32 %v2043_v63, %v2137_v50 }
  0xe5   : >> { %v689_v56 = vsel %vm580_vm0, %v2179_v51, 0.0  ;;  %v2191_v29 = vpop.eup %1424 }
  0xe6   : >> { %vm566_vm3 = vcmp.eq.s32.totalorder %v1759_v3, %v2141_v44  ;;  %v669_v54 = vmul.f32 1.442695, %v2171_v25  ;;  %v695_v17 = vsel %vm580_vm0, %v2191_v29, 0.0  ;;  %v2202_v24 = vpop.eup %1426  ;;  %v675_v44 = vmul.f32 1.442695, %v2277_v20 }
  0xe7   : >> { %v415_v39 = vpop.xlane.xlu0 %414  ;;  %v2149_v35 = vpop.xlane.xlu1 %450  ;;  %v727_v58 = vsel %vm566_vm3, %v631_v12, 0.0  ;;  %v665_v12 = vmul.f32 1.442695, %v2159_v42 }
  0xe8   : >> { %v747_v60 = vsel %vm580_vm0, %v727_v58, 0.0  ;;  %v2183_v58 = vsub.f32 %v2014_v46, %v625_v38  ;;  %v453_v13 = vcvt.f32.s32 %v2149_v35 }
  0xe9   : >> { %748 = vadd.xlane.f32.xlu0 %v747_v60  ;;  %1428 = vpow2.f32 %v665_v12  ;;  %v417_v12 = vcvt.f32.s32 %v415_v39 }
  0xea   : >> { %1430 = vpow2.f32 %v669_v54  ;;  %v673_v22 = vmul.f32 1.442695, %v2183_v58 }
  0xeb   : >> { %v2161_v62 = vpop.xlane.xlu0 %438  ;;  %v2163_v53 = vpop.xlane.xlu1 %474 }
  0xed   : >> { %678 = vadd.xlane.f32.xlu0 %v677_v37  ;;  %v632_v37 = vsub.f32 %v1971_v57, %v592_v48  ;;  %v2206_v57 = vsub.f32 %v1981_v61, %v2119_v18  ;;  %v2217_v61 = vsub.f32 %v1991_v1, %v2121_v49  ;;  %v2232_v1 = vsub.f32 %v2001_v40, %v2123_v47 }
  0xee   : >> { %v2248_v47 = vsub.f32 %v2011_v45, %v2126_v19  ;;  %v2260_v45 = vsub.f32 %v2027_v52, %v2131_v0  ;;  %v789_v19 = vsel %vm564_vm1, %v2155_v21, 0.0  ;;  %v477_v52 = vcvt.f32.s32 %v2163_v53 }
  0xef   : >> { %v2173_v8 = vpop.xlane.xlu0 %462  ;;  %v2175_v36 = vpop.xlane.xlu1 %498  ;;  %v651_v15 = vmul.f32 1.442695, %v632_v37  ;;  %v655_v28 = vmul.f32 1.442695, %v2206_v57  ;;  %v663_v40 = vmul.f32 1.442695, %v2232_v1 }
  0xf0   : >> { %v667_v31 = vmul.f32 1.442695, %v2248_v47  ;;  %v805_v0 = vsel %vm580_vm0, %v789_v19, 0.0  ;;  %v791_v21 = vsel %vm566_vm3, %v2167_v23, 0.0  ;;  %v478_v63 = vshll.u32 %v477_v52, 16 }
  0xf1   : >> { %684 = vadd.xlane.f32.xlu0 %v683_v55  ;;  %v647_v55 = vmul.f32 1.442695, %v2109_v16  ;;  %v418_v16 = vshll.u32 %v417_v12, 16  ;;  %v501_v50 = vcvt.f32.s32 %v2175_v36 }
  0xf3   : >> { %v2185_v60 = vpop.xlane.xlu0 %486  ;;  %v2187_v41 = vpop.xlane.xlu1 %522  ;;  %1432 = vpow2.f32 %v647_v55  ;;  %v502_v52 = vshll.u32 %v501_v50, 16 }
  0xf4   : >> { %1434 = vpow2.f32 %v673_v22  ;;  %v2212_v26 = vpop.eup %1428 }
  0xf5   : >> { %690 = vadd.xlane.f32.xlu0 %v689_v56  ;;  %v701_v56 = vsel %vm580_vm0, %v2202_v24, 0.0  ;;  %1436 = vpow2.f32 %v651_v15  ;;  %v707_v18 = vsel %vm580_vm0, %v2212_v26, 0.0  ;;  %v2227_v55 = vpop.eup %1430  ;;  %v659_v15 = vmul.f32 1.442695, %v2217_v61 }
  0xf6   : >> { %1438 = vpow2.f32 %v655_v28  ;;  %v713_v28 = vsel %vm580_vm0, %v2227_v55, 0.0 }
  0xf7   : >> { %v2196_v46 = vpop.xlane.xlu0 %510  ;;  %v2198_v38 = vpop.xlane.xlu1 %546  ;;  %1440 = vpow2.f32 %v659_v15 }
  0xf8   : >> { %1442 = vpow2.f32 %v663_v40  ;;  %v549_v50 = vcvt.f32.s32 %v2198_v38  ;;  %v441_v38 = vcvt.f32.s32 %v2161_v62 }
  0xf9   : >> { %696 = vadd.xlane.f32.xlu0 %v695_v17  ;;  %1444 = vpow2.f32 %v667_v31 }
  0xfb   : >> { %v2208_v48 = vpop.xlane.xlu0 %534  ;;  %v413_v39 = vpop.xlane.xlu1 %412 }
  0xfc   : >> { %v416_v54 = vcvt.f32.s32 %v413_v39 }
  0xfd   : >> { %702 = vadd.xlane.f32.xlu0 %v701_v56  ;;  %v2238_v39 = vpop.eup %1432 }
  0xfe   : >> { %v2219_v17 = vadd.s32 %v418_v16, %v416_v54  ;;  %v429_v54 = vcvt.f32.s32 %v2139_v14  ;;  %v2243_v56 = vpop.eup %1434 }
  0xff   : >> { %v2221_v22 = vpop.xlane.xlu0 %558  ;;  %v719_v15 = vsel %vm580_vm0, %v2243_v56, 0.0 }
 0x100   : >> { %vm567_vm4 = vcmp.eq.s32.totalorder %v1759_v3, %v2219_v17  ;;  %v537_v17 = vcvt.f32.s32 %v2208_v48 }
 0x101   : >> { %708 = vadd.xlane.f32.xlu0 %v707_v18  ;;  %v728_v49 = vsel %vm567_vm4, %v632_v37, 0.0  ;;  %v680_v18 = vsel %vm580_vm0, %v2238_v39, 0.0 }
 0x102   : >> { %v750_v12 = vsel %vm580_vm0, %v728_v49, 0.0  ;;  %v2252_v49 = vpop.eup %1436 }
 0x103   : >> { %v425_v16 = vpop.xlane.xlu0 %424  ;;  %751 = vadd.xlane.f32.xlu1 %v750_v12  ;;  %v430_v12 = vshll.u32 %v429_v54, 16  ;;  %v686_v35 = vsel %vm580_vm0, %v2252_v49, 0.0  ;;  %v792_v43 = vsel %vm567_vm4, %v2252_v49, 0.0 }
 0x104   : >> { %v428_v37 = vcvt.f32.s32 %v425_v16 }
 0x105   : >> { %714 = vadd.xlane.f32.xlu0 %v713_v28  ;;  %v2270_v28 = vpop.eup %1438 }
 0x106   : >> { %v2266_v16 = vadd.s32 %v430_v12, %v428_v37  ;;  %v692_v53 = vsel %vm580_vm0, %v2270_v28, 0.0  ;;  %v2289_v31 = vpop.eup %1440  ;;  %v811_v12 = vsel %vm580_vm0, %v791_v21, 0.0 }
 0x107   : >> { %v449_v14 = vpop.xlane.xlu0 %448  ;;  %681 = vadd.xlane.f32.xlu1 %v680_v18  ;;  %v454_v18 = vshll.u32 %v453_v13, 16  ;;  %v2304_v36 = vpop.eup %1442 }
 0x108   : >> { %v452_v54 = vcvt.f32.s32 %v449_v14  ;;  %vm568_vm1 = vcmp.eq.s32.totalorder %v1759_v3, %v2266_v16  ;;  %v538_v16 = vshll.u32 %v537_v17, 16 }
 0x109   : >> { %720 = vadd.xlane.f32.xlu0 %v719_v15  ;;  %v671_v15 = vmul.f32 1.442695, %v2260_v45  ;;  %v793_v23 = vsel %vm568_vm1, %v2179_v51, 0.0 }
 0x10a   : >> { %v2283_v37 = vadd.s32 %v454_v18, %v452_v54 }
 0x10b   : >> { %v473_v40 = vpop.xlane.xlu0 %472  ;;  %687 = vadd.xlane.f32.xlu1 %v686_v35  ;;  %1446 = vpow2.f32 %v671_v15  ;;  %v698_v35 = vsel %vm580_vm0, %v2289_v31, 0.0  ;;  %v817_v15 = vsel %vm580_vm0, %v793_v23, 0.0 }
 0x10c   : >> { %v476_v13 = vcvt.f32.s32 %v473_v40  ;;  %vm570_vm3 = vcmp.eq.s32.totalorder %v1759_v3, %v2283_v37  ;;  %v437_v40 = vpop.xlane.xlu1 %436  ;;  %1448 = vpow2.f32 %v675_v44 }
 0x10d   : >> { %806 = vadd.xlane.f32.xlu0 %v805_v0  ;;  %v525_v0 = vcvt.f32.s32 %v2187_v41  ;;  %v795_v51 = vsel %vm570_vm3, %v2191_v29, 0.0 }
 0x10e   : >> { %v2298_v19 = vadd.s32 %v478_v63, %v476_v13 }
 0x10f   : >> { %v497_v14 = vpop.xlane.xlu0 %496  ;;  %693 = vadd.xlane.f32.xlu1 %v692_v53  ;;  %v704_v53 = vsel %vm580_vm0, %v2304_v36, 0.0  ;;  %v526_v63 = vshll.u32 %v525_v0, 16 }
 0x110   : >> { %v500_v54 = vcvt.f32.s32 %v497_v14  ;;  %vm572_vm5 = vcmp.eq.s32.totalorder %v1759_v3, %v2298_v19  ;;  %v2318_v14 = vpop.eup %1444  ;;  %v461_v44 = vpop.xlane.xlu1 %460 }
 0x111   : >> { %812 = vadd.xlane.f32.xlu0 %v811_v12  ;;  %v823_v12 = vsel %vm580_vm0, %v795_v51, 0.0  ;;  %v797_v29 = vsel %vm572_vm5, %v2202_v24, 0.0 }
 0x112   : >> { %v2312_v21 = vadd.s32 %v502_v52, %v500_v54  ;;  %v550_v52 = vshll.u32 %v549_v50, 16  ;;  %v829_v0 = vsel %vm580_vm0, %v797_v29, 0.0  ;;  %v489_v29 = vcvt.f32.s32 %v2185_v60 }
 0x113   : >> { %v521_v18 = vpop.xlane.xlu0 %520  ;;  %699 = vadd.xlane.f32.xlu1 %v698_v35  ;;  %v710_v35 = vsel %vm580_vm0, %v2318_v14, 0.0 }
 0x114   : >> { %v524_v13 = vcvt.f32.s32 %v521_v18  ;;  %vm574_vm6 = vcmp.eq.s32.totalorder %v1759_v3, %v2312_v21  ;;  %v485_v62 = vpop.xlane.xlu1 %484 }
 0x115   : >> { %818 = vadd.xlane.f32.xlu0 %v817_v15  ;;  %v2332_v18 = vpop.eup %1446  ;;  %v799_v24 = vsel %vm574_vm6, %v2212_v26, 0.0 }
 0x116   : >> { %v2326_v23 = vadd.s32 %v526_v63, %v524_v13  ;;  %v716_v51 = vsel %vm580_vm0, %v2332_v18, 0.0  ;;  %v2346_v13 = vpop.eup %1448  ;;  %v440_v63 = vcvt.f32.s32 %v437_v40  ;;  %v835_v50 = vsel %vm580_vm0, %v799_v24, 0.0 }
 0x117   : >> { %v545_v41 = vpop.xlane.xlu0 %544  ;;  %705 = vadd.xlane.f32.xlu1 %v704_v53  ;;  %v442_v53 = vshll.u32 %v441_v38, 16  ;;  %v513_v24 = vcvt.f32.s32 %v2196_v46  ;;  %v729_v46 = vsel %vm568_vm1, %v2129_v59, 0.0  ;;  %v731_v59 = vsel %vm570_vm3, %v2135_v27, 0.0 }
 0x118   : >> { %v548_v54 = vcvt.f32.s32 %v545_v41  ;;  %vm576_vm7 = vcmp.eq.s32.totalorder %v1759_v3, %v2326_v23  ;;  %v465_v41 = vcvt.f32.s32 %v2173_v8  ;;  %v790_v8 = vsel %vm565_vm2, %v2238_v39, 0.0  ;;  %v509_v38 = vpop.xlane.xlu1 %508 }
 0x119   : >> { %824 = vadd.xlane.f32.xlu0 %v823_v12  ;;  %v801_v26 = vsel %vm576_vm7, %v2227_v55, 0.0  ;;  %v722_v12 = vsel %vm580_vm0, %v2346_v13, 0.0  ;;  %v808_v60 = vsel %vm580_vm0, %v790_v8, 0.0  ;;  %v759_v8 = vsel %vm580_vm0, %v731_v59, 0.0 }
 0x11a   : >> { %v2340_v15 = vadd.s32 %v550_v52, %v548_v54  ;;  %v466_v40 = vshll.u32 %v465_v41, 16  ;;  %v2363_v54 = vadd.s32 %v442_v53, %v440_v63  ;;  %v841_v55 = vsel %vm580_vm0, %v801_v26, 0.0 }
 0x11b   : >> { %711 = vadd.xlane.f32.xlu1 %v710_v35  ;;  %v464_v35 = vcvt.f32.s32 %v461_v44  ;;  %v488_v44 = vcvt.f32.s32 %v485_v62  ;;  %v514_v53 = vshll.u32 %v513_v24, 16  ;;  %v512_v63 = vcvt.f32.s32 %v509_v38 }
 0x11c   : >> { %vm578_vm8 = vcmp.eq.s32.totalorder %v1759_v3, %v2340_v15  ;;  %vm569_vm2 = vcmp.eq.s32.totalorder %v1759_v3, %v2363_v54  ;;  %v533_v49 = vpop.xlane.xlu1 %532  ;;  %v561_v26 = vcvt.f32.s32 %v2221_v22  ;;  %v733_v27 = vsel %vm572_vm5, %v2147_v10, 0.0 }
 0x11d   : >> { %830 = vadd.xlane.f32.xlu0 %v829_v0  ;;  %v803_v52 = vsel %vm578_vm8, %v2243_v56, 0.0  ;;  %v490_v0 = vshll.u32 %v489_v29, 16  ;;  %v2376_v39 = vadd.s32 %v466_v40, %v464_v35  ;;  %v814_v56 = vsel %vm580_vm0, %v792_v43, 0.0 }
 0x11e   : >> { %v794_v62 = vsel %vm569_vm2, %v2270_v28, 0.0  ;;  %v536_v29 = vcvt.f32.s32 %v533_v49  ;;  %v562_v37 = vshll.u32 %v561_v26, 16  ;;  %v765_v38 = vsel %vm580_vm0, %v733_v27, 0.0 }
 0x11f   : >> { %717 = vadd.xlane.f32.xlu1 %v716_v51  ;;  %v847_v51 = vsel %vm580_vm0, %v803_v52, 0.0  ;;  %v491_v41 = vadd.s32 %v490_v0, %v488_v44  ;;  %vm571_vm4 = vcmp.eq.s32.totalorder %v1759_v3, %v2376_v39  ;;  %v820_v48 = vsel %vm580_vm0, %v794_v62, 0.0 }
 0x120   : >> { %v796_v28 = vsel %vm571_vm4, %v2289_v31, 0.0  ;;  %v557_v40 = vpop.xlane.xlu1 %556  ;;  %v539_v35 = vadd.s32 %v538_v16, %v536_v29  ;;  %v735_v10 = vsel %vm574_vm6, %v2159_v42, 0.0  ;;  %v737_v0 = vsel %vm576_vm7, %v2171_v25, 0.0 }
 0x121   : >> { %836 = vadd.xlane.f32.xlu0 %v835_v50  ;;  %v753_v50 = vsel %vm580_vm0, %v729_v46, 0.0  ;;  %vm573_vm1 = vcmp.eq.s32.totalorder %v1759_v3, %v491_v41  ;;  %v826_v22 = vsel %vm580_vm0, %v796_v28, 0.0  ;;  %v739_v24 = vsel %vm578_vm8, %v2183_v58, 0.0 }
 0x122   : >> { %v798_v31 = vsel %vm573_vm1, %v2304_v36, 0.0  ;;  %vm577_vm5 = vcmp.eq.s32.totalorder %v1759_v3, %v539_v35  ;;  %v783_v43 = vsel %vm580_vm0, %v739_v24, 0.0  ;;  %v730_v44 = vsel %vm569_vm2, %v2206_v57, 0.0 }
 0x123   : >> { %723 = vadd.xlane.f32.xlu1 %v722_v12  ;;  %v515_v12 = vadd.s32 %v514_v53, %v512_v63  ;;  %v832_v19 = vsel %vm580_vm0, %v798_v31, 0.0  ;;  %v802_v21 = vsel %vm577_vm5, %v2332_v18, 0.0  ;;  %v756_v58 = vsel %vm580_vm0, %v730_v44, 0.0 }
 0x124   : >> { %v844_v23 = vsel %vm580_vm0, %v802_v21, 0.0  ;;  %v732_v15 = vsel %vm571_vm4, %v2217_v61, 0.0  ;;  %v738_v61 = vsel %vm577_vm5, %v2260_v45, 0.0  ;;  %v2489_v31 = vstv %s997_s4 }
 0x125   : >> { %842 = vadd.xlane.f32.xlu0 %v841_v55  ;;  %v560_v55 = vcvt.f32.s32 %v557_v40  ;;  %vm575_vm3 = vcmp.eq.s32.totalorder %v1759_v3, %v515_v12  ;;  %v780_v39 = vsel %vm580_vm0, %v738_v61, 0.0 }
 0x126   : >> { %v800_v52 = vsel %vm575_vm3, %v2318_v14, 0.0  ;;  %v777_v14 = vsel %vm580_vm0, %v737_v0, 0.0  ;;  %v736_v57 = vsel %vm575_vm3, %v2248_v47, 0.0 }
 0x127   : >> { %809 = vadd.xlane.f32.xlu1 %v808_v60  ;;  %v563_v36 = vadd.s32 %v562_v37, %v560_v55  ;;  %v771_v60 = vsel %vm580_vm0, %v735_v10, 0.0  ;;  %v838_v42 = vsel %vm580_vm0, %v800_v52, 0.0  ;;  %v774_v54 = vsel %vm580_vm0, %v736_v57, 0.0 }
 0x129   : >> { %848 = vadd.xlane.f32.xlu0 %v847_v51  ;;  %vm579_vm6 = vcmp.eq.s32.totalorder %v1759_v3, %v563_v36  ;;  %v734_v51 = vsel %vm573_vm1, %v2232_v1, 0.0 }
 0x12a   : >> { %v804_v25 = vsel %vm579_vm6, %v2346_v13, 0.0  ;;  %v762_v13 = vsel %vm580_vm0, %v732_v15, 0.0  ;;  %v768_v46 = vsel %vm580_vm0, %v734_v51, 0.0  ;;  %v740_v1 = vsel %vm579_vm6, %v2277_v20, 0.0 }
 0x12b   : >> { %815 = vadd.xlane.f32.xlu1 %v814_v56  ;;  %v850_v18 = vsel %vm580_vm0, %v804_v25, 0.0  ;;  %v786_v56 = vsel %vm580_vm0, %v740_v1, 0.0 }
 0x12d   : >> { %754 = vadd.xlane.f32.xlu0 %v753_v50 }
 0x12f   : >> { %821 = vadd.xlane.f32.xlu1 %v820_v48 }
 0x131   : >> { %760 = vadd.xlane.f32.xlu0 %v759_v8 }
 0x133   : >> { %827 = vadd.xlane.f32.xlu1 %v826_v22 }
 0x135   : >> { %766 = vadd.xlane.f32.xlu0 %v765_v38 }
 0x137   : >> { %833 = vadd.xlane.f32.xlu1 %v832_v19  ;;  %v999_v19 = vadd.s32 %v2489_v31, %v1757_v2 }
 0x139   : >> { %772 = vadd.xlane.f32.xlu0 %v771_v60  ;;  %vm1015_vm7 = vcmp.lt.s32.totalorder %v999_v19, 300 }
 0x13b   : >> { %839 = vadd.xlane.f32.xlu1 %v838_v42 }
 0x13d   : >> { %778 = vadd.xlane.f32.xlu0 %v777_v14 }
 0x13f   : >> { %845 = vadd.xlane.f32.xlu1 %v844_v23  ;;  %v1001_v23 = vadd.s32 %v2489_v31, %v1765_v5 }
 0x141   : >> { %784 = vadd.xlane.f32.xlu0 %v783_v43  ;;  %vm1017_vm8 = vcmp.lt.s32.totalorder %v1001_v23, 300 }
 0x143   : >> { %851 = vadd.xlane.f32.xlu1 %v850_v18 }
 0x147   : >> { %757 = vadd.xlane.f32.xlu1 %v756_v58 }
 0x14b   : >> { %763 = vadd.xlane.f32.xlu1 %v762_v13 }
 0x14f   : >> { %769 = vadd.xlane.f32.xlu1 %v768_v46 }
 0x153   : >> { %775 = vadd.xlane.f32.xlu1 %v774_v54 }
 0x156   : >> { %v743_v53 = vpop.xlane.xlu0 %742 }
 0x157   : >> { %781 = vadd.xlane.f32.xlu1 %v780_v39 }
 0x159   : >> { %v2476_v16 = vpop.xlane.xlu1 %745 }
 0x15b   : >> { %787 = vadd.xlane.f32.xlu1 %v786_v56 }
 0x176   : >> { %v749_v17 = vpop.xlane.xlu0 %748 }
 0x17a   : >> { %v679_v47 = vpop.xlane.xlu0 %678 }
 0x17b   : >> { %1450 = vlog2.f32 %v679_v47 }
 0x17e   : >> { %v685_v49 = vpop.xlane.xlu0 %684 }
 0x17f   : >> { %1452 = vlog2.f32 %v685_v49 }
 0x180   : >> { %1454 = vrcp.f32 %v679_v47 }
 0x181   : >> { %1456 = vrcp.f32 %v685_v49 }
 0x182   : >> { %v691_v62 = vpop.xlane.xlu0 %690 }
 0x185   : >> { %v1451_v41 = vpop.eup %1450 }
 0x186   : >> { %v854_v63 = vmul.f32 0.6931472, %v1451_v41  ;;  %v2472_v45 = vpop.xlane.xlu0 %696 }
 0x188   : >> { %v885_v50 = vsub.f32 %v743_v53, %v854_v63 }
 0x189   : >> { %v1453_v59 = vpop.eup %1452 }
 0x18a   : >> { %v858_v48 = vmul.f32 0.6931472, %v1453_v59  ;;  %v2474_v20 = vpop.xlane.xlu0 %702  ;;  %v1455_v22 = vpop.eup %1454 }
 0x18b   : >> { %v1457_v10 = vpop.eup %1456 }
 0x18c   : >> { %v887_v26 = vsub.f32 %v749_v17, %v858_v48 }
 0x18e   : >> { %v2478_v28 = vpop.xlane.xlu0 %708 }
 0x190   : >> { %v2480_v12 = vpop.xlane.xlu1 %751 }
 0x192   : >> { %v2482_v29 = vpop.xlane.xlu0 %714 }
 0x194   : >> { %v682_v8 = vpop.xlane.xlu1 %681 }
 0x195   : >> { %1458 = vlog2.f32 %v682_v8 }
 0x196   : >> { %v2484_v40 = vpop.xlane.xlu0 %720 }
 0x198   : >> { %v688_v27 = vpop.xlane.xlu1 %687 }
 0x199   : >> { %1460 = vlog2.f32 %v688_v27 }
 0x19a   : >> { %v807_v37 = vpop.xlane.xlu0 %806  ;;  %1462 = vrcp.f32 %v691_v62 }
 0x19b   : >> { %v902_v35 = vmul.f32 %v1455_v22, %v807_v37  ;;  %1464 = vrcp.f32 %v682_v8 }
 0x19c   : >> { %v2491_v55 = vpop.xlane.xlu1 %693  ;;  %1466 = vlog2.f32 %v691_v62 }
 0x19d   : >> { %v933_v38 = vsub.f32 1.0, %v902_v35  ;;  %1468 = vrcp.f32 %v2472_v45 }
 0x19e   : >> { %v813_v52 = vpop.xlane.xlu0 %812  ;;  %1470 = vrcp.f32 %v688_v27  ;;  %v1003_v27 = vadd.s32 %v2489_v31, %v1771_v7 }
 0x19f   : >> { %v1459_v36 = vpop.eup %1458  ;;  %v949_v60 = vmul.f32 %v933_v38, %v933_v38  ;;  %v906_v0 = vmul.f32 %v1457_v10, %v813_v52  ;;  %1472 = vrcp.f32 %v2474_v20  ;;  %v2540_v10 = vadd.s32 %v2489_v31, %v1777_v9 }
 0x1a0   : >> { %v2495_v42 = vmul.f32 0.6931472, %v1459_v36  ;;  %v2497_v21 = vpop.xlane.xlu1 %699  ;;  %1474 = vlog2.f32 %v2472_v45  ;;  %v1002_v45 = vadd.s32 %v2489_v31, %v1768_v6  ;;  %vm1019_vm4 = vcmp.lt.s32.totalorder %v1003_v27, 300 }
 0x1a1   : >> { %v965_v14 = vmul.f32 %v949_v60, %v885_v50  ;;  %v935_v24 = vsub.f32 1.0, %v906_v0  ;;  %1476 = vrcp.f32 %v2478_v28  ;;  %vm1021_vm1 = vcmp.lt.s32.totalorder %v2540_v10, 300  ;;  %v2808_v10 = vld [vmem:[#allocation21_spill] sm:$0xff] }
 0x1a2   : >> { %v819_v25 = vpop.xlane.xlu0 %818  ;;  %v886_v43 = vsub.f32 %v2476_v16, %v2495_v42  ;;  %1478 = vlog2.f32 %v2474_v20  ;;  %vm1018_vm2 = vcmp.lt.s32.totalorder %v1002_v45, 300 }
 0x1a3   : >> { %v1461_v18 = vpop.eup %1460  ;;  %v981_v44 = vsub.f32 0.0, %v965_v14  ;;  %v951_v58 = vmul.f32 %v935_v24, %v935_v24  ;;  %1480 = vrcp.f32 %v2482_v29 }
 0x1a4   : >> { %v2503_v15 = vmul.f32 0.6931472, %v1461_v18  ;;  %v2505_v13 = vpop.xlane.xlu1 %705  ;;  %v1463_v41 = vpop.eup %1462  ;;  %1482 = vlog2.f32 %v2478_v28 }
 0x1a5   : >> { %v1031_v51 = vsel %vm1015_vm7, %v981_v44, 0.0  ;;  %v967_v46 = vmul.f32 %v951_v58, %v887_v26  ;;  %v910_v63 = vmul.f32 %v1463_v41, %v819_v25  ;;  %v1465_v62 = vpop.eup %1464  ;;  %1484 = vlog2.f32 %v2482_v29 }
 0x1a6   : >> { %v2508_v34 = vadd.f32 %v1698_v34, %v1031_v51   ;;  %v825_v54 = vpop.xlane.xlu0 %824  ;;  %v888_v61 = vsub.f32 %v2480_v12, %v2503_v15  ;;  %v1467_v16 = vpop.eup %1466  ;;  %1486 = vrcp.f32 %v2484_v40 }
 0x1a7   : >> { %v983_v39 = vsub.f32 0.0, %v967_v46  ;;  %v937_v26 = vsub.f32 1.0, %v910_v63  ;;  %v1469_v22 = vpop.eup %1468  ;;  %v862_v36 = vmul.f32 0.6931472, %v1467_v16  ;;  %1488 = vlog2.f32 %v2484_v40 }
 0x1a8   : >> { %v2801_v57 = vmov %v2508_v34  ;;  %v2512_v1 = vpop.xlane.xlu1 %711  ;;  %v1471_v35 = vpop.eup %1470  ;;  %v914_v20 = vmul.f32 %v1469_v22, %v825_v54  ;;  %1490 = vrcp.f32 %v2491_v55 }
 0x1a9   : >> { %v1033_v56 = vsel %vm1017_vm8, %v983_v39, 0.0  ;;  %v1473_v60 = vpop.eup %1472  ;;  %v953_v0 = vmul.f32 %v937_v26, %v937_v26  ;;  %1492 = vlog2.f32 %v2491_v55 }
 0x1aa   : >> { %v2515_v32 = vadd.f32 %v1690_v32, %v1033_v56   ;;  %v831_v17 = vpop.xlane.xlu0 %830  ;;  %v1475_v14 = vpop.eup %1474  ;;  %v939_v18 = vsub.f32 1.0, %v914_v20  ;;  %1494 = vrcp.f32 %v2497_v21 }
 0x1ab   : >> { %v918_v24 = vmul.f32 %v1473_v60, %v831_v17  ;;  %v1477_v58 = vpop.eup %1476  ;;  %v866_v56 = vmul.f32 0.6931472, %v1475_v14  ;;  %v2805_v60 = vld [vmem:[#allocation25_spill] sm:$0xff]  ;;  %v2806_v14 = vld [vmem:[#allocation8_spill] sm:$0xff]  ;;  %1496 = vlog2.f32 %v2497_v21 }
 0x1ac   : >> { %v2802_v53 = vmov %v2515_v32  ;;  %v2517_v47 = vpop.xlane.xlu1 %717  ;;  %v1000_v32 = vadd.s32 %v2489_v31, %v1762_v4  ;;  %v1479_v29 = vpop.eup %1478  ;;  %1498 = vrcp.f32 %v2505_v13 }
 0x1ad   : >> { %v941_v17 = vsub.f32 1.0, %v918_v24  ;;  %v1481_v22 = vpop.eup %1480  ;;  %1500 = vrcp.f32 %v2512_v1 }
 0x1ae   : >> { %v837_v34 = vpop.xlane.xlu0 %836  ;;  %vm1016_vm0 = vcmp.lt.s32.totalorder %v1000_v32, 300  ;;  %v1483_v20 = vpop.eup %1482  ;;  %1502 = vlog2.f32 %v2505_v13 }
 0x1af   : >> { %v922_v39 = vmul.f32 %v1477_v58, %v837_v34  ;;  %v874_v24 = vmul.f32 0.6931472, %v1483_v20  ;;  %1504 = vlog2.f32 %v2512_v1 }
 0x1b0   : >> { %v2521_v49 = vpop.xlane.xlu1 %723  ;;  %1506 = vrcp.f32 %v2517_v47 }
 0x1b1   : >> { %v943_v12 = vsub.f32 1.0, %v922_v39  ;;  %1508 = vlog2.f32 %v2517_v47 }
 0x1b2   : >> { %v2524_v50 = vpop.xlane.xlu0 %842  ;;  %1510 = vrcp.f32 %v2521_v49 }
 0x1b3   : >> { %v926_v15 = vmul.f32 %v1481_v22, %v2524_v50  ;;  %v1009_v50 = vadd.s32 %v2489_v31, %v2806_v14  ;;  %v959_v45 = vmul.f32 %v943_v12, %v943_v12  ;;  %1512 = vlog2.f32 %v2521_v49 }
 0x1b4   : >> { %v810_v59 = vpop.xlane.xlu1 %809 }
 0x1b5   : >> { %v904_v48 = vmul.f32 %v1465_v62, %v810_v59  ;;  %vm1025_vm5 = vcmp.lt.s32.totalorder %v1009_v50, 300 }
 0x1b6   : >> { %v2530_v8 = vpop.xlane.xlu0 %848 }
 0x1b7   : >> { %v934_v37 = vsub.f32 1.0, %v904_v48  ;;  %v955_v48 = vmul.f32 %v939_v18, %v939_v18 }
 0x1b8   : >> { %v816_v38 = vpop.xlane.xlu1 %815 }
 0x1b9   : >> { %v950_v19 = vmul.f32 %v934_v37, %v934_v37  ;;  %v908_v52 = vmul.f32 %v1471_v35, %v816_v38  ;;  %v870_v35 = vmul.f32 0.6931472, %v1479_v29 }
 0x1ba   : >> { %v755_v42 = vpop.xlane.xlu0 %754 }
 0x1bb   : >> { %v966_v23 = vmul.f32 %v950_v19, %v886_v43  ;;  %v936_v28 = vsub.f32 1.0, %v908_v52  ;;  %v889_v25 = vsub.f32 %v755_v42, %v862_v36  ;;  %v1007_v43 = vadd.s32 %v2489_v31, %v1783_v11  ;;  %v1485_v36 = vpop.eup %1484 }
 0x1bc   : >> { %v2544_v44 = vpop.xlane.xlu1 %821 }
 0x1bd   : >> { %v982_v51 = vsub.f32 0.0, %v966_v23  ;;  %v952_v46 = vmul.f32 %v936_v28, %v936_v28  ;;  %v969_v54 = vmul.f32 %v953_v0, %v889_v25  ;;  %vm1023_vm3 = vcmp.lt.s32.totalorder %v1007_v43, 300  ;;  %v1487_v23 = vpop.eup %1486 }
 0x1be   : >> { %v761_v41 = vpop.xlane.xlu0 %760  ;;  %v945_v28 = vsub.f32 1.0, %v926_v15  ;;  %v930_v58 = vmul.f32 %v1487_v23, %v2530_v8  ;;  %v2809_v8 = vld [vmem:[#allocation10_spill] sm:$0xff]  ;;  %v2810_v15 = vld [vmem:[#allocation19_spill] sm:$0xff] }
 0x1bf   : >> { %v1032_v63 = vsel %vm1016_vm0, %v982_v51, 0.0  ;;  %v968_v62 = vmul.f32 %v952_v46, %v888_v61  ;;  %v985_v59 = vsub.f32 0.0, %v969_v54  ;;  %v891_v34 = vsub.f32 %v761_v41, %v866_v56  ;;  %v2807_v51 = vld [vmem:[#allocation23_spill] sm:$0xff] }
 0x1c0   : >> { %v2555_v33 = vadd.f32 %v1694_v33, %v1032_v63   ;;  %v2557_v26 = vpop.xlane.xlu1 %827  ;;  %v878_v41 = vmul.f32 0.6931472, %v1485_v36  ;;  %v947_v22 = vsub.f32 1.0, %v930_v58 }
 0x1c1   : >> { %v984_v37 = vsub.f32 0.0, %v968_v62  ;;  %v1035_v32 = vsel %vm1019_vm4, %v985_v59, 0.0  ;;  %v971_v61 = vmul.f32 %v955_v48, %v891_v34  ;;  %v1011_v62 = vadd.s32 %v2489_v31, %v2809_v8 }
 0x1c2   : >> { %v2803_v16 = vmov %v2555_v33  ;;  %v2563_v30 = vadd.f32 %v1682_v30, %v1035_v32   ;;  %v767_v38 = vpop.xlane.xlu0 %766  ;;  %v957_v33 = vmul.f32 %v941_v17, %v941_v17  ;;  %v1489_v17 = vpop.eup %1488  ;;  %v961_v34 = vmul.f32 %v945_v28, %v945_v28 }
 0x1c3   : >> { %v1034_v19 = vsel %vm1018_vm2, %v984_v37, 0.0  ;;  %v893_v52 = vsub.f32 %v767_v38, %v870_v35  ;;  %v987_v27 = vsub.f32 0.0, %v971_v61  ;;  %v1491_v48 = vpop.eup %1490  ;;  %v882_v12 = vmul.f32 0.6931472, %v1489_v17  ;;  %v2812_v38 = vld [vmem:[#allocation12_spill] sm:$0xff]  ;;  %v2816_v17 = vld [vmem:[#allocation15_spill] sm:$0xff] }
 0x1c4   : >> { %v2804_v40 = vmov %v2563_v30  ;;  %v2567_v0 = vadd.f32 %v2805_v60, %v1034_v19   ;;  %v2569_v42 = vpop.xlane.xlu1 %833  ;;  %v912_v43 = vmul.f32 %v1491_v48, %v2544_v44  ;;  %vm1027_vm6 = vcmp.lt.s32.totalorder %v1011_v62, 300 }
 0x1c5   : >> { %v973_v30 = vmul.f32 %v957_v33, %v893_v52  ;;  %v1037_v25 = vsel %vm1021_vm1, %v987_v27, 0.0  ;;  %v1013_v33 = vadd.s32 %v2489_v31, %v2812_v38  ;;  %v1493_v52 = vpop.eup %1492  ;;  %v963_v36 = vmul.f32 %v947_v22, %v947_v22 }
 0x1c6   : >> { %v773_v18 = vpop.xlane.xlu0 %772  ;;  %v2579_v46 = vadd.f32 %v2807_v51, %v1037_v25   ;;  %v1495_v27 = vpop.eup %1494  ;;  %v938_v14 = vsub.f32 1.0, %v912_v43 }
 0x1c7   : >> { %v989_v54 = vsub.f32 0.0, %v973_v30  ;;  %v895_v29 = vsub.f32 %v773_v18, %v874_v24  ;;  %v916_v30 = vmul.f32 %v1495_v27, %v2557_v26  ;;  %vm1029_vm7 = vcmp.lt.s32.totalorder %v1013_v33, 300  ;;  %v1497_v28 = vpop.eup %1496 }
 0x1c8   : >> { %v840_v39 = vpop.xlane.xlu1 %839  ;;  %v864_v18 = vmul.f32 0.6931472, %v1493_v52  ;;  %v1499_v58 = vpop.eup %1498  ;;  %v954_v51 = vmul.f32 %v938_v14, %v938_v14 }
 0x1c9   : >> { %v1039_v55 = vsel %vm1023_vm3, %v989_v54, 0.0  ;;  %v975_v56 = vmul.f32 %v959_v45, %v895_v29  ;;  %v2815_v54 = vld [vmem:[#allocation5_spill] sm:$0xff]  ;;  %v940_v26 = vsub.f32 1.0, %v916_v30  ;;  %v1501_v8 = vpop.eup %1500 }
 0x1ca   : >> { %v2585_v63 = vadd.f32 %v2808_v10, %v1039_v55   ;;  %v779_v59 = vpop.xlane.xlu0 %778  ;;  %v1004_v1 = vadd.s32 %v2489_v31, %v2815_v54  ;;  %v920_v55 = vmul.f32 %v1499_v58, %v2569_v42  ;;  %v1503_v48 = vpop.eup %1502  ;;  %v924_v47 = vmul.f32 %v1501_v8, %v840_v39  ;;  %v2822_v58 = vld [vmem:[#allocation22_spill] sm:$0xff]  ;;  %v2824_v54 = vld [vmem:[#allocation9_spill] sm:$0xff] }
 0x1cb   : >> { %v991_v37 = vsub.f32 0.0, %v975_v56  ;;  %v897_v21 = vsub.f32 %v779_v59, %v878_v41  ;;  %v868_v59 = vmul.f32 0.6931472, %v1497_v28 }
 0x1cc   : >> { %v846_v32 = vpop.xlane.xlu1 %845  ;;  %vm1020_vm8 = vcmp.lt.s32.totalorder %v1004_v1, 300  ;;  %v942_v43 = vsub.f32 1.0, %v920_v55  ;;  %v944_v39 = vsub.f32 1.0, %v924_v47  ;;  %v1010_v1 = vadd.s32 %v2489_v31, %v2824_v54  ;;  %v2826_v47 = vld [vmem:[#allocation11_spill] sm:$0xff] }
 0x1cd   : >> { %v1041_v35 = vsel %vm1025_vm5, %v991_v37, 0.0  ;;  %v977_v20 = vmul.f32 %v961_v34, %v897_v21  ;;  %v2818_v34 = vld [vmem:[#allocation6_spill] sm:$0xff]  ;;  %v956_v21 = vmul.f32 %v940_v26, %v940_v26  ;;  %vm1064_vm5 = vcmask (%p2633_p8), 7168  }
 0x1ce   : >> { %v2593_v24 = vadd.f32 %v2810_v15, %v1041_v35   ;;  %v785_v19 = vpop.xlane.xlu0 %784  ;;  %v958_v27 = vmul.f32 %v942_v43, %v942_v43  ;;  %vm1026_vm4 = vcmp.lt.s32.totalorder %v1010_v1, 300  ;;  %v1066_v54 = vsel (%p2633_p8), %vm1064_vm5, %v2803_v16, 0.0 }
 0x1cf   : >> { %v993_v60 = vsub.f32 0.0, %v977_v20  ;;  %v899_v44 = vsub.f32 %v785_v19, %v882_v12  ;;  %v2819_v12 = vld [vmem:[#allocation7_spill] sm:$0xff]  ;;  %v872_v19 = vmul.f32 0.6931472, %v1503_v48  ;;  %v1068_v1 = vsel (%p2633_p8), %vm1064_vm5, %v2802_v53, 0.0 }
 0x1d0   : >> { %v2811_v61 = vmov %v2593_v24  ;;  %v852_v50 = vpop.xlane.xlu1 %851  ;;  %v2813_v24 = vld [vmem:[#allocation17_spill] sm:$0xff]  ;;  %v1008_v15 = vadd.s32 %v2489_v31, %v2819_v12  ;;  %v1076_v4 = vsel (%p2633_p8), %vm1064_vm5, %v2579_v46, 0.0  ;;  %v1080_v9 = vsel (%p2633_p8), %vm1064_vm5, %v2585_v63, 0.0 }
 0x1d1   : >> { %v1043_v13 = vsel %vm1027_vm6, %v993_v60, 0.0  ;;  %v979_v23 = vmul.f32 %v963_v36, %v899_v44  ;;  %v2820_v36 = vld [vmem:[#allocation24_spill] sm:$0xff] }
 0x1d2   : >> { %v2601_v22 = vadd.f32 %v2813_v24, %v1043_v13   ;;  %vm1024_vm2 = vcmp.lt.s32.totalorder %v1008_v15, 300  ;;  %v2827_v15 = vld [vmem:[#allocation18_spill] sm:$0xff] }
 0x1d3   : >> { %v995_v25 = vsub.f32 0.0, %v979_v23 }
 0x1d4   : >> { %v2814_v45 = vmov %v2601_v22  ;;  %v758_v29 = vpop.xlane.xlu1 %757  ;;  %v1006_v22 = vadd.s32 %v2489_v31, %v2818_v34  ;;  %v1012_v34 = vadd.s32 %v2489_v31, %v2826_v47 }
 0x1d5   : >> { %v1045_v56 = vsel %vm1029_vm7, %v995_v25, 0.0  ;;  %v890_v41 = vsub.f32 %v758_v29, %v864_v18  ;;  %v960_v18 = vmul.f32 %v944_v39, %v944_v39 }
 0x1d6   : >> { %v2609_v20 = vadd.f32 %v2816_v17, %v1045_v56   ;;  %vm1022_vm0 = vcmp.lt.s32.totalorder %v1006_v22, 300  ;;  %vm1028_vm1 = vcmp.lt.s32.totalorder %v1012_v34, 300  ;;  %v2847_v34 = vmov %v2801_v57 }
 0x1d7   : >> { %v970_v62 = vmul.f32 %v954_v51, %v890_v41  ;;  %v1063_v34 = vld [vmem:[#allocation2] sm:$0x1] (%p2633_p8) }
 0x1d8   : >> { %v2817_v10 = vmov %v2609_v20  ;;  %v764_v37 = vpop.xlane.xlu1 %763  ;;  %v1505_v20 = vpop.eup %1504 }
 0x1d9   : >> { %v986_v42 = vsub.f32 0.0, %v970_v62  ;;  %v892_v35 = vsub.f32 %v764_v37, %v868_v59  ;;  %v1507_v52 = vpop.eup %1506  ;;  %v876_v28 = vmul.f32 0.6931472, %v1505_v20  ;;  %v2825_v59 = vld [vmem:[#allocation20_spill] sm:$0xff]  ;;  %v2828_v20 = vld [vmem:[#allocation13_spill] sm:$0xff] }
 0x1da   : >> { %v928_v14 = vmul.f32 %v1507_v52, %v846_v32  ;;  %v1509_v23 = vpop.eup %1508 }
 0x1db   : >> { %v1036_v38 = vsel %vm1020_vm8, %v986_v42, 0.0  ;;  %v972_v33 = vmul.f32 %v956_v21, %v892_v35  ;;  %v1511_v25 = vpop.eup %1510  ;;  %v880_v8 = vmul.f32 0.6931472, %v1509_v23 }
 0x1dc   : >> { %v2617_v29 = vadd.f32 %v2820_v36, %v1036_v38   ;;  %v770_v44 = vpop.xlane.xlu1 %769  ;;  %v946_v26 = vsub.f32 1.0, %v928_v14  ;;  %v932_v55 = vmul.f32 %v1511_v25, %v852_v50  ;;  %v1513_v62 = vpop.eup %1512  ;;  %v2829_v14 = vld [vmem:[#allocation16_spill] sm:$0xff] }
 0x1dd   : >> { %v988_v30 = vsub.f32 0.0, %v972_v33  ;;  %v894_v13 = vsub.f32 %v770_v44, %v872_v19  ;;  %v884_v50 = vmul.f32 0.6931472, %v1513_v62  ;;  %v1014_v33 = vadd.s32 %v2489_v31, %v2828_v20 }
 0x1de   : >> { %v2821_v60 = vmov %v2617_v29  ;;  %v962_v37 = vmul.f32 %v946_v26, %v946_v26  ;;  %v948_v21 = vsub.f32 1.0, %v932_v55  ;;  %v2833_v20 = vmov %v2817_v10 }
 0x1df   : >> { %v1038_v49 = vsel %vm1022_vm0, %v988_v30, 0.0  ;;  %v974_v24 = vmul.f32 %v958_v27, %v894_v13  ;;  %vm1030_vm3 = vcmp.lt.s32.totalorder %v1014_v33, 300  ;;  %v2839_v26 = vmov %v2585_v63 }
 0x1e0   : >> { %v2620_v27 = vadd.f32 %v2822_v58, %v1038_v49   ;;  %v776_v29 = vpop.xlane.xlu1 %775  ;;  %v964_v52 = vmul.f32 %v948_v21, %v948_v21  ;;  %v2830_v49 = vld [vmem:[#allocation14_spill] sm:$0xff]  ;;  %v2844_v31 = vmov %v2567_v0  ;;  %v2846_v33 = vmov %v2803_v16 }
 0x1e1   : >> { %v990_v56 = vsub.f32 0.0, %v974_v24  ;;  %v896_v32 = vsub.f32 %v776_v29, %v876_v28  ;;  %v2837_v24 = vmov %v2811_v61  ;;  %v2841_v28 = vmov %v2579_v46 }
 0x1e2   : >> { %v2823_v51 = vmov %v2620_v27  ;;  %v2842_v29 = vmov %v2821_v60  ;;  %v1065_v58 = vsel (%p2633_p8), %vm1064_vm5, %v2801_v57, 0.0  ;;  %v1074_v2 = vsel (%p2633_p8), %vm1064_vm5, %v2821_v60, 0.0 }
 0x1e3   : >> { %v1040_v41 = vsel %vm1024_vm2, %v990_v56, 0.0  ;;  %v976_v17 = vmul.f32 %v960_v18, %v896_v32  ;;  %v2845_v32 = vmov %v2802_v53  ;;  %v1067_v55 = vadd.f32 (%p2633_p8), %v1066_v54, %v1065_v58 }
 0x1e4   : >> { %v1056_v48 = vadd.f32 %v2825_v59, %v1040_v41   ;;  %v782_v22 = vpop.xlane.xlu1 %781  ;;  %v1070_v56 = vsel (%p2633_p8), %vm1064_vm5, %v2567_v0, 0.0  ;;  %v1078_v6 = vsel (%p2633_p8), %vm1064_vm5, %v2823_v51, 0.0  ;;  %v1084_v53 = vsel (%p2633_p8), %vm1064_vm5, %v2811_v61, 0.0 }
 0x1e5   : >> { %v992_v43 = vsub.f32 0.0, %v976_v17  ;;  %v898_v42 = vsub.f32 %v782_v22, %v880_v8  ;;  %v2835_v22 = vmov %v2814_v45  ;;  %v1069_v41 = vadd.f32 (%p2633_p8), %v1068_v1, %v1067_v55 }
 0x1e6   : >> { %v2838_v25 = vmov %v1056_v48  ;;  %v1072_v17 = vsel (%p2633_p8), %vm1064_vm5, %v2804_v40, 0.0  ;;  %v1082_v31 = vsel (%p2633_p8), %vm1064_vm5, %v1056_v48, 0.0  ;;  %v1088_v46 = vsel (%p2633_p8), %vm1064_vm5, %v2814_v45, 0.0 }
 0x1e7   : >> { %v1042_v35 = vsel %vm1026_vm4, %v992_v43, 0.0  ;;  %v978_v12 = vmul.f32 %v962_v37, %v898_v42  ;;  %v1071_v8 = vadd.f32 (%p2633_p8), %v1070_v56, %v1069_v41  ;;  %v1092_v63 = vsel (%p2633_p8), %vm1064_vm5, %v2817_v10, 0.0 }
 0x1e8   : >> { %v1058_v38 = vadd.f32 %v2827_v15, %v1042_v35   ;;  %v788_v19 = vpop.xlane.xlu1 %787 }
 0x1e9   : >> { %v994_v39 = vsub.f32 0.0, %v978_v12  ;;  %v900_v36 = vsub.f32 %v788_v19, %v884_v50  ;;  %v1073_v3 = vadd.f32 (%p2633_p8), %v1072_v17, %v1071_v8 }
 0x1eb   : >> { %v1044_v44 = vsel %vm1028_vm1, %v994_v39, 0.0  ;;  %v980_v27 = vmul.f32 %v964_v52, %v900_v36  ;;  %v1075_v5 = vadd.f32 (%p2633_p8), %v1074_v2, %v1073_v3 }
 0x1ec   : >> { %v1060_v13 = vadd.f32 %v2829_v14, %v1044_v44   ;;  %312 = sbr.rel (!%p2633_p8) target bundleno = 37 (0x25), region = 72 }
 0x1ed   : >> { %v996_v30 = vsub.f32 0.0, %v980_v27  ;;  %v2840_v27 = vmov %v2823_v51  ;;  %v1077_v7 = vadd.f32 (%p2633_p8), %v1076_v4, %v1075_v5 }
 0x1ee   : >> { %v2834_v21 = vmov %v1060_v13  ;;  %v1090_v24 = vsel (%p2633_p8), %vm1064_vm5, %v1060_v13, 0.0 }
 0x1ef   : >> { %v1046_v23 = vsel %vm1030_vm3, %v996_v30, 0.0  ;;  %v2843_v30 = vmov %v2804_v40  ;;  %v1079_v11 = vadd.f32 (%p2633_p8), %v1078_v6, %v1077_v7  ;;  %v1086_v40 = vsel (%p2633_p8), %vm1064_vm5, %v1058_v38, 0.0 }
 0x1f0   : >> { %v1062_v18 = vadd.f32 %v2830_v49, %v1046_v23   ;;  %v2836_v23 = vmov %v1058_v38 }
 0x1f1   : > { %v1081_v57 = vadd.f32 (%p2633_p8), %v1080_v9, %v1079_v11 }
 0x1f2   : >> { %v2832_v19 = vmov %v1062_v18  ;;  %v1094_v51 = vsel (%p2633_p8), %vm1064_vm5, %v1062_v18, 0.0 }
 0x1f3   : > { %v1083_v16 = vadd.f32 %v1082_v31, %v1081_v57 }
 0x1f5   : > { %v1085_v0 = vadd.f32 %v1084_v53, %v1083_v16 }
 0x1f7   : > { %v1087_v60 = vadd.f32 %v1086_v40, %v1085_v0 }
 0x1f9   : > { %v1089_v28 = vadd.f32 %v1088_v46, %v1087_v60 }
 0x1fb   : > { %v1091_v25 = vadd.f32 %v1090_v24, %v1089_v28 }
 0x1fd   : > { %v1093_v29 = vadd.f32 %v1092_v63, %v1091_v25 }
 0x1ff   : > { %v1095_v26 = vadd.f32 %v1094_v51, %v1093_v29 }
 0x201   : > { %1096 = vadd.xlane.f32.xlu0 %v1095_v26 }
 0x28e   : > { %v1097_v61 = vpop.xlane.xlu0 %1096 }
 0x28f   : > { %v1098_v32 = vrot.slane %v1097_v61, 4 }
 0x291   : > { %v1099_v62 = vadd.f32 %v1098_v32, %v1097_v61 }
 0x293   : > { %v1100_v59 = vrot.slane %v1099_v62, 2 }
 0x295   : > { %v1101_v48 = vadd.f32 %v1100_v59, %v1099_v62 }
 0x297   : > { %v1102_v45 = vrot.slane %v1101_v48, 1 }
 0x299   : > { %v1103_v47 = vadd.f32 %v1102_v45, %v1101_v48 }
 0x29b   : > { %1248 = vpush %v1103_v47 }
 0x2cc   : > { %s1249_s8 = spop %1248 }
 0x2cd   : > { %v1105_v10 = vstv %s1249_s8 }
 0x2ce   : > { %v1106_v22 = vadd.f32 %v1105_v10, %v1063_v34 }
 0x2d0   : > { %1108 = vst.msk [vmem:[#allocation2] sm:$0x1] %vm1107_vm9, %v1106_v22 }
 0x2d1   : > { %1527 = shalt.err (!%p1524_p2)
}
 0x2d2   : > { %s1528_s17 = scalar_lea.hbm %s2752_s2, 16 }
 0x2d3   : > { %p1529_p3 = scmp.ne.s32.totalorder %s2752_s2, %s1528_s17  ;;  %p1534_p6 = scmp.lt.u32.totalorder %s1528_s17, %s2752_s2 }
 0x2d5   : > { %p1530_p4 = pnand %p1529_p3, %p2715_p9 }
 0x2d7   : > { %p1531_p5 = pneg %p1530_p4 }
 0x2d9   : > { %p1536_p7 = pnand %p1534_p6, %p1531_p5 }
 0x2db   : > { %1539 = shalt.err (!%p1536_p7)
}
 0x2dc   : > { %1251 = dma.vmem_to_hbm [thread:$0]  (%p2715_p9), %s1119_s7, 16, %s2752_s2, [#allocation3]  }
 0x2dd   : > { %1621 = dma.done.wait (%p2715_p9), [#allocation3], 16  }
 0x2de   : > { %1623 = vsyncadd (%p2715_p9), [#allocation3], 4294967280 }
 0x2df PF: > { %s13_s11 = sadd.s32 1, %s1634_s11   ;;  %s2849_s9 = smov %s1630_s10 }
 0x2e0   : > { %p10_p8 = scmp.ge.s32.totalorder %s13_s11, 4   ;;  %s2850_s10 = smov %s2852_s13 }
 0x2e2   :  { %12 = sbr.rel (!%p10_p8) target bundleno = 2 (0x2), region = 83 }
 0x2e9   :  { %1131 = vsyncpa [#allocation3], 1 }
 0x2ea   :  { %1133 = vsyncpa [#allocation3 + $0x1], 1 }

</bundles_post_ra>
